<compile_context>
chip_gen: v5e
topology: v5e:2x2
jax: 0.10.0
libtpu: 0.0.40
codegen_flags: <defaults>
</compile_context>

<pallas_src>
import jax
import jax.numpy as jnp
from jax.experimental import pallas as pl
from jax.experimental.pallas import tpu as pltpu


def _round_up(x, m):
    return ((x + m - 1) // m) * m


# ---------------------------------------------------------------------------
# Kernels
# ---------------------------------------------------------------------------

def _linear_kernel_f32_out(x_ref, w_ref, b_ref, o_ref):
    """One (tm, tn) output tile; o_ref (f32) is resident across the K axis and
    doubles as the accumulator (no scratch, no finalize pass).

    x_ref: (tm, tk), w_ref: (tk, tn)  [weight already transposed to (IN, OUT)],
    b_ref: (1, tn),  o_ref: (tm, tn) float32.
    """
    k = pl.program_id(2)

    @pl.when(k == 0)
    def _():
        # Fold the bias into the accumulator init -> added exactly once.
        o_ref[...] = jnp.zeros_like(o_ref) + b_ref[...]

    o_ref[...] += jnp.dot(x_ref[...], w_ref[...],
                          preferred_element_type=jnp.float32)


def _linear_kernel_acc(x_ref, w_ref, b_ref, o_ref, acc_ref):
    """Same contraction but with an f32 VMEM accumulator, for non-f32 outputs."""
    k = pl.program_id(2)

    @pl.when(k == 0)
    def _():
        acc_ref[...] = jnp.zeros_like(acc_ref) + b_ref[...]

    acc_ref[...] += jnp.dot(x_ref[...], w_ref[...],
                            preferred_element_type=jnp.float32)

    @pl.when(k == pl.num_programs(2) - 1)
    def _():
        o_ref[...] = acc_ref[...].astype(o_ref.dtype)


# ---------------------------------------------------------------------------
# Tiling / weight prep (one-time, hoisted out of the per-call path)
# ---------------------------------------------------------------------------

def choose_tiles(M, N, K, *, tm_max=512, tn_max=512, tk_max=512):
    """Pick MXU-friendly 128-multiple tiles sized for large VMEM blocks.

    * tk divides the 128-aligned K, so x never pads along K beyond lane
      alignment (no extra HBM pass over activations).
    * tm shrinks until the grid has >= 2 parallel (M x N) blocks when the
      shape allows, so both v7x TensorCores / megacore halves get work.
    """
    tn = min(tn_max, _round_up(N, 128))

    Kp = _round_up(K, 128)
    tk = 128
    for cand in range(min(tk_max, Kp), 0, -128):
        if Kp % cand == 0:
            tk = cand
            break

    tm = min(tm_max, _round_up(M, 128))

    def par_blocks(tm_):
        return (_round_up(M, tm_) // tm_) * (_round_up(N, tn) // tn)

    while par_blocks(tm) < 2 and tm > 128:
        tm //= 2

    return tm, tn, tk


def prepare_linear_params(weight, bias, *, tn, tk, compute_dtype=None):
    """One-time prep of nn.Linear parameters (reuse across forward calls).

    Transposes W from PyTorch's (OUT, IN) to the MXU-native (IN, OUT) RHS
    layout and zero-pads W and b to tile multiples; optional bf16 cast.
    """
    N, K = weight.shape
    Kp, Np = _round_up(K, tk), _round_up(N, tn)
    w_t = jnp.pad(weight.T, ((0, Kp - K), (0, Np - N)))
    if compute_dtype is not None:
        w_t = w_t.astype(compute_dtype)
    b_p = jnp.pad(bias, (0, Np - N)).reshape(1, Np).astype(jnp.float32)
    return w_t, b_p


# ---------------------------------------------------------------------------
# Pallas forward
# ---------------------------------------------------------------------------

def linear_forward_pallas(x, w_t_padded, b_padded, out_features, *,
                          tm, tn, tk, compute_dtype=None, out_dtype=None):
    """y = x @ W.T + b using the pre-transposed / pre-padded weight."""
    M, K = x.shape
    Kp, Np = w_t_padded.shape
    assert Kp % tk == 0 and Np % tn == 0 and Kp >= K

    out_dtype = out_dtype or x.dtype

    x_p = x
    if compute_dtype is not None and x_p.dtype != compute_dtype:
        x_p = x_p.astype(compute_dtype)
    Mp = _round_up(M, tm)
    if Mp != M or Kp != K:
        # K padding only happens when K isn't 128-aligned (tk divides Kp).
        x_p = jnp.pad(x_p, ((0, Mp - M), (0, Kp - K)))

    grid = (Mp // tm, Np // tn, Kp // tk)

    in_bytes = jnp.dtype(x_p.dtype).itemsize
    out_bytes = jnp.dtype(out_dtype).itemsize
    acc_needed = jnp.dtype(out_dtype) != jnp.dtype(jnp.float32)

    # Double-buffered per-step VMEM footprint (+ f32 accumulator if any).
    vmem_bytes = (2 * (tm * tk + tk * tn) * in_bytes      # x, W blocks
                  + 2 * tn * 4                            # bias block
                  + 2 * tm * tn * out_bytes               # output block
                  + (tm * tn * 4 if acc_needed else 0))   # accumulator
    # Size the scoped limit to the real footprint; cap at 48 MiB so v7x's
    # 64 MiB physical VMEM keeps headroom (v5e/v6e defaults are 16/32 MiB).
    vmem_limit = min(max(int(vmem_bytes * 1.25) + (2 << 20), 16 << 20), 48 << 20)

    kernel = _linear_kernel_acc if acc_needed else _linear_kernel_f32_out
    scratch = [pltpu.VMEM((tm, tn), jnp.float32)] if acc_needed else []

    out = pl.pallas_call(
        kernel,
        out_shape=jax.ShapeDtypeStruct((Mp, Np), out_dtype),
        grid_spec=pltpu.PrefetchScalarGridSpec(
            num_scalar_prefetch=0,
            grid=grid,
            in_specs=[
                pl.BlockSpec((tm, tk), lambda i, j, k: (i, k)),   # x
                pl.BlockSpec((tk, tn), lambda i, j, k: (k, j)),   # W.T (K, N)
                pl.BlockSpec((1, tn), lambda i, j, k: (0, j)),    # bias
            ],
            out_specs=pl.BlockSpec((tm, tn), lambda i, j, k: (i, j)),
            scratch_shapes=scratch,
        ),
        compiler_params=pltpu.CompilerParams(
            dimension_semantics=("parallel", "parallel", "arbitrary"),
            vmem_limit_bytes=vmem_limit,
        ),
    )(x_p, w_t_padded, b_padded)

    return out[:M, :out_features]


def linear_forward(x, weight, bias, *, min_pallas_flops=2 ** 25,
                   compute_dtype=None):
    """torch.nn.Linear.forward with a size-based dispatch."""
    M, K = x.shape
    N = weight.shape[0]
    if 2 * M * N * K < min_pallas_flops:
        # Tiny problems: a Pallas grid is pure launch/pipeline-ramp overhead.
        return x @ weight.T + bias
    tm, tn, tk = choose_tiles(M, N, K)
    # TODO(synk): in a real model, call prepare_linear_params once at weight
    # load time and reuse (w_t, b_p) across every forward call.
    w_t, b_p = prepare_linear_params(weight, bias, tn=tn, tk=tk,
                                     compute_dtype=compute_dtype)
    return linear_forward_pallas(x, w_t, b_p, N, tm=tm, tn=tn, tk=tk,
                                 compute_dtype=compute_dtype,
                                 out_dtype=x.dtype)


if __name__ == "__main__":
    key = jax.random.PRNGKey(0)

    # --- Case 1: tiny shape implied by the module (dispatches to plain XLA). ---
    batch, in_f, out_f = 8, 32, 16
    k1, k2, k3, key = jax.random.split(key, 4)
    bound = 1.0 / (in_f ** 0.5)
    w_small = jax.random.uniform(k2, (out_f, in_f), jnp.float32, -bound, bound)
    b_small = jax.random.uniform(k3, (out_f,), jnp.float32, -bound, bound)
    x_small = jax.random.normal(k1, (batch, in_f), jnp.float32)

    y_small = linear_forward(x_small, w_small, b_small)
    jax.block_until_ready(y_small)
    ref_small = x_small @ w_small.T + b_small
    assert y_small.shape == (batch, out_f)
    assert jnp.allclose(y_small, ref_small, atol=1e-5, rtol=1e-5)

    # --- Case 2: f32 Pallas path with one-time weight prep, reused twice. ---
    B2, IN2, OUT2 = 256, 512, 512
    k1, k2, k3, k4, key = jax.random.split(key, 5)
    bound2 = 1.0 / (IN2 ** 0.5)
    w_big = jax.random.uniform(k2, (OUT2, IN2), jnp.float32, -bound2, bound2)
    b_big = jax.random.uniform(k3, (OUT2,), jnp.float32, -bound2, bound2)
    x_big_a = jax.random.normal(k1, (B2, IN2), jnp.float32)
    x_big_b = jax.random.normal(k4, (B2, IN2), jnp.float32)

    tm, tn, tk = choose_tiles(B2, OUT2, IN2)
    w_prep, b_prep = prepare_linear_params(w_big, b_big, tn=tn, tk=tk)
    for x_big in (x_big_a, x_big_b):
        y_big = linear_forward_pallas(x_big, w_prep, b_prep, OUT2,
                                      tm=tm, tn=tn, tk=tk)
        jax.block_until_ready(y_big)
        ref_big = x_big @ w_big.T + b_big
        assert y_big.shape == (B2, OUT2)
        assert jnp.allclose(y_big, ref_big, atol=2e-3, rtol=2e-3)

    # --- Case 3: bf16-compute Pallas path (f32 accumulation / f32 output). ---
    y_bf16 = linear_forward(x_big_a, w_big, b_big, compute_dtype=jnp.bfloat16)
    jax.block_until_ready(y_bf16)
    ref_bf16 = x_big_a @ w_big.T + b_big
    assert y_bf16.shape == (B2, OUT2)
    assert jnp.allclose(y_bf16, ref_bf16, atol=1e-1, rtol=1e-1)

    print("KERNEL_OK")
</pallas_src>

<mosaic_0001>
module attributes {stable_mosaic.version = 11 : i64} {
  func.func @_linear_kernel_f32_out(%arg0: i32, %arg1: i32, %arg2: i32, %arg3: memref<128x512xf32, #tpu.memory_space<vmem>>, %arg4: memref<512x512xf32, #tpu.memory_space<vmem>>, %arg5: memref<1x512xf32, #tpu.memory_space<vmem>>, %arg6: memref<128x512xf32, #tpu.memory_space<vmem>>) attributes {dimension_semantics = [#tpu.dimension_semantics<parallel>, #tpu.dimension_semantics<parallel>, #tpu.dimension_semantics<arbitrary>], iteration_bounds = array<i64: 2, 1, 1>, scalar_prefetch = 0 : i64, scratch_operands = 0 : i64, tpu.core_type = #tpu.core_type<tc>, window_params = [{transform_indices = @transform_0, window_bounds = array<i64: 128, 512>}, {transform_indices = @transform_1, window_bounds = array<i64: 512, 512>}, {transform_indices = @transform_2, window_bounds = array<i64: 1, 512>}, {transform_indices = @transform_3, window_bounds = array<i64: 128, 512>}]} {
    %c0_i32 = arith.constant 0 : i32
    %0 = arith.cmpi eq, %arg2, %c0_i32 : i32
    %1 = arith.extui %0 : i1 to i32
    %c0_i32_0 = arith.constant 0 : i32
    %2 = arith.cmpi ne, %1, %c0_i32_0 : i32
    scf.if %2 {
      %cst_8 = arith.constant 0.000000e+00 : f32
      %9 = vector.broadcast %cst_8 : f32 to vector<128x512xf32>
      %c0_9 = arith.constant 0 : index
      %c0_10 = arith.constant 0 : index
      %10 = vector.load %arg5[%c0_9, %c0_10] : memref<1x512xf32, #tpu.memory_space<vmem>>, vector<1x512xf32>
      %11 = vector.broadcast %10 : vector<1x512xf32> to vector<128x512xf32>
      %12 = arith.addf %9, %11 : vector<128x512xf32>
      %c0_11 = arith.constant 0 : index
      %c0_12 = arith.constant 0 : index
      %13 = vector.load %arg6[%c0_11, %c0_12] : memref<128x512xf32, #tpu.memory_space<vmem>>, vector<128x512xf32>
      tpu.vector_store %arg6[%c0_11, %c0_12], %12 {strides = array<i32>} : memref<128x512xf32, #tpu.memory_space<vmem>>, vector<128x512xf32>,
    } else {
    }
    %c0 = arith.constant 0 : index
    %c0_1 = arith.constant 0 : index
    %3 = vector.load %arg6[%c0, %c0_1] : memref<128x512xf32, #tpu.memory_space<vmem>>, vector<128x512xf32>
    %c0_2 = arith.constant 0 : index
    %c0_3 = arith.constant 0 : index
    %4 = vector.load %arg3[%c0_2, %c0_3] : memref<128x512xf32, #tpu.memory_space<vmem>>, vector<128x512xf32>
    %c0_4 = arith.constant 0 : index
    %c0_5 = arith.constant 0 : index
    %5 = vector.load %arg4[%c0_4, %c0_5] : memref<512x512xf32, #tpu.memory_space<vmem>>, vector<512x512xf32>
    %cst = arith.constant dense<0.000000e+00> : vector<128x512xf32>
    %6 = tpu.matmul %4, %5, %cst {dimension_numbers = #tpu.dot_dimension_numbers<[1], [0], [0], [1], [0, 0, 1, 1], [], []>} : vector<128x512xf32>, vector<512x512xf32>, vector<128x512xf32> -> vector<128x512xf32>
    %7 = arith.addf %3, %6 : vector<128x512xf32>
    %c0_6 = arith.constant 0 : index
    %c0_7 = arith.constant 0 : index
    %8 = vector.load %arg6[%c0_6, %c0_7] : memref<128x512xf32, #tpu.memory_space<vmem>>, vector<128x512xf32>
    tpu.vector_store %arg6[%c0_6, %c0_7], %7 {strides = array<i32>} : memref<128x512xf32, #tpu.memory_space<vmem>>, vector<128x512xf32>,
    return
  }
  func.func @transform_0(%arg0: i32, %arg1: i32, %arg2: i32) -> (i32, i32) {
    %c0_i32 = arith.constant 0 : i32
    return %arg0, %arg2 : i32, i32
  }
  func.func @transform_1(%arg0: i32, %arg1: i32, %arg2: i32) -> (i32, i32) {
    %c0_i32 = arith.constant 0 : i32
    return %arg2, %arg1 : i32, i32
  }
  func.func @transform_2(%arg0: i32, %arg1: i32, %arg2: i32) -> (i32, i32) {
    %c0_i32 = arith.constant 0 : i32
    %c0_i32_0 = arith.constant 0 : i32
    return %c0_i32, %arg1 : i32, i32
  }
  func.func @transform_3(%arg0: i32, %arg1: i32, %arg2: i32) -> (i32, i32) {
    %c0_i32 = arith.constant 0 : i32
    return %arg0, %arg1 : i32, i32
  }
}

</mosaic_0001>

<bundles_post_ra>
// kernel: tpu_custom_call.1
= control target key start
LH: loop header
LB: loop body
LE: loop exit
PB: predicated region body
PF: predicated region fallthrough
CT: control target
= control target key end

     0   :  { %8 = vsyncpa [#allocation3], 0  ;;  %s3366_s0 = inlined_call_operand.hbm [shape: f32[256,512], index: 0, kind: input, shape index: {}]   ;;  %s3367_s1 = inlined_call_operand.hbm [shape: f32[512,512], index: 1, kind: input, shape index: {}]   ;;  %s3368_s2 = inlined_call_operand.hbm [shape: f32[1,512], index: 2, kind: input, shape index: {}]   ;;  %s3369_s3 = inlined_call_operand.hbm [shape: f32[256,512], index: 3, kind: output, shape index: {}]  }
   0x1   :  { %10 = vsyncpa [#allocation3 + $0x1], 0 }
   0x2   :  { %11 = vsyncpa [#allocation6], 0 }
   0x3   :  { %12 = vsyncpa [#allocation4], 0 }
   0x4   :  { %14 = vsyncpa [#allocation4 + $0x1], 0  ;;  %s2425_s12 = smov 0   ;;  %s2427_s13 = smov 0  }
   0x5   :  { %s2429_s14 = smov 0   ;;  %s2431_s15 = smov 0  }
   0x6   :  { %s2433_s16 = smov 0   ;;  %s2435_s17 = smov 0  }
   0x7 LB: > { %s2044_s18 = sadd.s32 4294967295, %s2397_s17   ;;  %s2045_s19 = sadd.s32 4294967294, %s2397_s17   ;;  %s2397_s17 = sphi %s2435_s17, %s20_s17   ;;  %s2393_s16 = sphi %s2433_s16, %s3451_s16   ;;  %s2389_s15 = sphi %s2431_s15, %s3450_s15   ;;  %s2385_s14 = sphi %s2429_s14, %s3449_s14   ;;  %s2381_s13 = sphi %s2427_s13, %s3448_s13   ;;  %s2377_s12 = sphi %s2425_s12, %s3447_s12  }
   0x8   : > { %p61_p0 = scmp.ne.s32.totalorder %s2381_s13, %s2377_s12  ;;  %p2459_p1 = scmp.eq.s32.totalorder %s2044_s18, 0 }
   0x9   : > { %p147_p2 = scmp.eq.s32.totalorder %s2045_s19, 1  ;;  %p2046_p4 = scmp.ge.s32.totalorder %s2397_s17, 1 }
   0xa   : > { %p2465_p3 = por %p2459_p1, %p61_p0  ;;  %p154_p6 = scmp.lt.s32.totalorder %s2397_s17, 3 }
   0xb   : > { %p2470_p5 = por %p147_p2, %p61_p0  ;;  %s171_s25 = sshll.u32 %s3367_s1, 4  ;;  %s172_s25 = int_to_ptr.hbm [resolvable:$true] %s171_s25 }
   0xc   : > { %p2478_p7 = pnand %p2046_p4, %p154_p6  ;;  %s2399_s27 = smov [#allocation5]  }
   0xd   : > { %s173_s28 = sshll.u32 %s2399_s27, 4  ;;  %p2049_p10 = scmp.ge.s32.totalorder %s2397_s17, 2  ;;  %s174_s28 = int_to_ptr.vmem [resolvable:$true] %s173_s28 }
   0xe   : > { %p2081_p8 = pneg %p2478_p7  ;;  %s188_s4 = sshll.u32 %s3368_s2, 4  ;;  %s189_s4 = int_to_ptr.hbm [resolvable:$true] %s188_s4 }
   0xf   : > { %s2400_s5 = smov 512   ;;  %s2401_s6 = smov 32  }
  0x10   : > { %p2082_p9 = pnand %p2081_p8, %p2459_p1  ;;  %s2402_s7 = smov [#allocation7]  }
  0x11   : > { %s190_s8 = sshll.u32 %s2402_s7, 4  ;;  %p141_p11 = scmp.eq.s32.totalorder %s2044_s18, 1  ;;  %s191_s8 = int_to_ptr.vmem [resolvable:$true] %s190_s8 }
  0x12   : > { %2084 = dma.hbm_to_vmem [thread:$0]  (!%p2082_p9), %s172_s25, 32768, %s174_s28, [#allocation6], %s2400_s5, %s2400_s5, %s2401_s6  }
  0x13   : > { %2087 = dma.hbm_to_vmem [thread:$0]  (!%p2082_p9), %s189_s4, 64, %s191_s8, [#allocation6]  }
  0x14   : > { %s39_s9 = sadd.s32 1, %s2393_s16  ;;  %s48_s10 = sadd.s32 1, %s2385_s14 }
  0x15   : > { %p41_p12 = scmp.ge.s32.totalorder %s39_s9, 2  ;;  %p55_p13 = scmp.ne.s32.totalorder %s2385_s14, %s2381_s13 }
  0x16   : > { %p56_p0 = scmp.eq.s32.totalorder %s2397_s17, 0  ;;  %p2098_p4 = scmp.lt.s32.totalorder %s2397_s17, 2 }
  0x17   : > { %s3453_s9 = smov (%p41_p12, %s39_s9), 0  ;;  %p2500_p2 = por %p141_p11, %p55_p13 }
  0x18   : > { %s43_s19 = ssub.s32 %s2393_s16, %s3453_s9  ;;  %s201_s23 = sand.u32 1, %s2385_s14  }
  0x19   : > { %p46_p6 = scmp.eq.s32.totalorder %s43_s19, 0  ;;  %p57_p8 = por %p56_p0, %p55_p13 }
  0x1a   : > { %s2050_s24 = sshll.u32 %s201_s23, 9  ;;  %s2066_s18 = sshll.u32 %s2393_s16, 9 }
  0x1b   : > { %s2510_s25 = scalar_select %p46_p6, %s2385_s14, %s48_s10  }
  0x1c   : > { %s213_s29 = scalar_lea.hbm %s3366_s0, %s2066_s18  ;;  %s205_s4 = scalar_lea.vmem [#allocation2], %s2050_s24 }
  0x1d   : > { %s214_s30 = sshll.u32 %s213_s29, 4  ;;  %s216_s7 = sshll.u32 %s205_s4, 4  ;;  %s215_s30 = int_to_ptr.hbm [resolvable:$true] %s214_s30  ;;  %s217_s7 = int_to_ptr.vmem [resolvable:$true] %s216_s7 }
  0x1e   : > { %p2089_p9 = pnand %p2098_p4, %p57_p8  ;;  %s202_s8 = scalar_lea.sflag [#allocation3], %s201_s23 }
  0x1f   : > { %228 = sbr.rel (%p2478_p7) target bundleno = 750 (0x2ee), region = 32 }
  0x20   : > { %2091 = dma.hbm_to_vmem [thread:$0]  (!%p2089_p9), %s215_s30, 8192, %s217_s7, %s202_s8, %s2400_s5, %s2400_s5, %s2401_s6  }
  0x24   : > { %s2523_s10 = sand.u32 1, %s2381_s13  }
  0x25   : > { %s2055_s19 = sshll.u32 %s2523_s10, 9  ;;  %s231_s24 = scalar_lea.sflag [#allocation3], %s2523_s10 }
  0x26   : > { %s2529_s18 = scalar_lea.vmem [#allocation2], %s2055_s19 }
  0x27   : > { %2364 = dma.done.wait (%p2465_p3), %s231_s24, 8192  }
  0x28   : > { %2366 = vsyncadd (%p2465_p3), %s231_s24, 4294959104 }
  0x29   : > { %2368 = dma.done.wait (%p2459_p1), [#allocation6], 32832  }
  0x2a   : > { %2370 = vsyncadd (%p2459_p1), [#allocation6], 4294934464  ;;  %v673_v0 = vld [vmem:[#allocation5 + $0x5e0] sm:$0xff]  ;;  %v2540_v62 = vld [vmem:[%s2529_s18 + $0x10] sm:$0xff]  ;;  %s2809_s20 = scalar_lea.vmem [#allocation8], %s2055_s19  ;;  %s2068_s21 = sshll.u32 %s2389_s15, 9 }
  0x2b   : > { %v669_v1 = vld [vmem:[#allocation5 + $0x5c0] sm:$0xff]  ;;  %871 = vmatpush.msra.mxu2 %v673_v0  ;;  %v2543_v63 = vld [vmem:[%s2529_s18 + $0x18] sm:$0xff]  ;;  %v674_v0 = vld [vmem:[#allocation5 + $0x5e8] sm:$0xff]  ;;  %s1924_s6 = scalar_lea.hbm %s3369_s3, %s2068_s21  ;;  %s1925_s23 = sshll.u32 %s2809_s20, 4  ;;  %s1926_s23 = int_to_ptr.vmem [resolvable:$true] %s1925_s23 }
  0x2c   : > { %v737_v2 = vld [vmem:[#allocation5 + $0x7e0] sm:$0xff]  ;;  %s1927_s27 = sshll.u32 %s1924_s6, 4  ;;  %s1910_s15 = scalar_lea.sflag [#allocation4], %s2523_s10  ;;  %s1928_s27 = int_to_ptr.hbm [resolvable:$true] %s1927_s27 }
  0x2d   : > { %936 = vmatpush.msra.mxu3 %v737_v2  ;;  %v545_v3 = vld [vmem:[#allocation5 + $0x1e0] sm:$0xff]  ;;  %872 = vmatpush.msra.mxu2 %v669_v1  ;;  %v738_v1 = vld [vmem:[#allocation5 + $0x7e8] sm:$0xff]  ;;  %s2325_s28 = sshra.s32 %s1928_s27, 4  ;;  %s2331_s7 = scalar_lea.hbm %s3369_s3, 1024  ;;  %s2326_s28 = int_to_ptr.hbm [resolvable:$true] %s2325_s28 }
  0x2e   : > { %v609_v4 = vld [vmem:[#allocation5 + $0x3e0] sm:$0xff]  ;;  %741 = vmatpush.msra.mxu0 %v545_v3  ;;  %s2327_s29 = scalar_lea.hbm %s2326_s28, 512  ;;  %p2332_p11 = scmp.lt.s32.totalorder %s2326_s28, %s3369_s3 }
  0x2f   : > { %v665_v5 = vld [vmem:[#allocation5 + $0x5a0] sm:$0xff]  ;;  %806 = vmatpush.msra.mxu1 %v609_v4  ;;  %p2328_p1 = scmp.ne.s32.totalorder %s2326_s28, %s2327_s29  ;;  %p2333_p12 = scmp.lt.s32.totalorder %s2331_s7, %s2327_s29 }
  0x30   : > { %v733_v6 = vld [vmem:[#allocation5 + $0x7c0] sm:$0xff]  ;;  %873 = vmatpush.msra.mxu2 %v665_v5  ;;  %v2551_v5 = vld [vmem:[%s2529_s18 + $0x8] sm:$0xff] }
  0x31   : > { %v541_v7 = vld [vmem:[#allocation5 + $0x1c0] sm:$0xff]  ;;  %937 = vmatpush.msra.mxu3 %v733_v6  ;;  %v546_v6 = vld [vmem:[#allocation5 + $0x1e8] sm:$0xff]  ;;  %p2329_p3 = pnand %p2328_p1, %p2500_p2  ;;  %p2334_p13 = por %p2333_p12, %p2332_p11 }
  0x32   : > { %v605_v8 = vld [vmem:[#allocation5 + $0x3c0] sm:$0xff]  ;;  %742 = vmatpush.msra.mxu0 %v541_v7  ;;  %v610_v7 = vld [vmem:[#allocation5 + $0x3e8] sm:$0xff] }
  0x33   : > { %v729_v9 = vld [vmem:[#allocation5 + $0x7a0] sm:$0xff]  ;;  %807 = vmatpush.msra.mxu1 %v605_v8  ;;  %v670_v8 = vld [vmem:[#allocation5 + $0x5c8] sm:$0xff]  ;;  %p2330_p7 = pneg %p2329_p3 }
  0x34   : > { %v537_v10 = vld [vmem:[#allocation5 + $0x1a0] sm:$0xff]  ;;  %938 = vmatpush.msra.mxu3 %v729_v9  ;;  %v734_v9 = vld [vmem:[#allocation5 + $0x7c8] sm:$0xff] }
  0x35   : > { %v661_v11 = vld [vmem:[#allocation5 + $0x580] sm:$0xff]  ;;  %743 = vmatpush.msra.mxu0 %v537_v10  ;;  %v542_v10 = vld [vmem:[#allocation5 + $0x1c8] sm:$0xff]  ;;  %p2335_p0 = pnand %p2334_p13, %p2330_p7 }
  0x36   : > { %v601_v12 = vld [vmem:[#allocation5 + $0x3a0] sm:$0xff]  ;;  %874 = vmatpush.msra.mxu2 %v661_v11  ;;  %v606_v11 = vld [vmem:[#allocation5 + $0x3c8] sm:$0xff] }
  0x37   : > { %v725_v13 = vld [vmem:[#allocation5 + $0x780] sm:$0xff]  ;;  %808 = vmatpush.msra.mxu1 %v601_v12  ;;  %v666_v12 = vld [vmem:[#allocation5 + $0x5a8] sm:$0xff] }
  0x38   : > { %v533_v14 = vld [vmem:[#allocation5 + $0x180] sm:$0xff]  ;;  %939 = vmatpush.msra.mxu3 %v725_v13  ;;  %v730_v13 = vld [vmem:[#allocation5 + $0x7a8] sm:$0xff] }
  0x39   : > { %v597_v15 = vld [vmem:[#allocation5 + $0x380] sm:$0xff]  ;;  %744 = vmatpush.msra.mxu0 %v533_v14  ;;  %v2556_v14 = vld [vmem:[%s2529_s18 + $0x30] sm:$0xff] }
  0x3a   : > { %v657_v16 = vld [vmem:[#allocation5 + $0x560] sm:$0xff]  ;;  %809 = vmatpush.msra.mxu1 %v597_v15  ;;  %v2559_v15 = vld [vmem:[%s2529_s18 + $0x38] sm:$0xff] }
  0x3b   : > { %v721_v17 = vld [vmem:[#allocation5 + $0x760] sm:$0xff]  ;;  %875 = vmatpush.msra.mxu2 %v657_v16  ;;  %v538_v16 = vld [vmem:[#allocation5 + $0x1a8] sm:$0xff] }
  0x3c   : > { %v529_v18 = vld [vmem:[#allocation5 + $0x160] sm:$0xff]  ;;  %940 = vmatpush.msra.mxu3 %v721_v17  ;;  %v602_v17 = vld [vmem:[#allocation5 + $0x3a8] sm:$0xff] }
  0x3d   : > { %v593_v19 = vld [vmem:[#allocation5 + $0x360] sm:$0xff]  ;;  %745 = vmatpush.msra.mxu0 %v529_v18  ;;  %v662_v18 = vld [vmem:[#allocation5 + $0x588] sm:$0xff] }
  0x3e   : > { %v653_v20 = vld [vmem:[#allocation5 + $0x540] sm:$0xff]  ;;  %810 = vmatpush.msra.mxu1 %v593_v19  ;;  %v726_v19 = vld [vmem:[#allocation5 + $0x788] sm:$0xff] }
  0x3f   : > { %v717_v21 = vld [vmem:[#allocation5 + $0x740] sm:$0xff]  ;;  %876 = vmatpush.msra.mxu2 %v653_v20 }
  0x40   : > { %v525_v22 = vld [vmem:[#allocation5 + $0x140] sm:$0xff]  ;;  %941 = vmatpush.msra.mxu3 %v717_v21  ;;  %v2567_v21 = vld [vmem:[%s2529_s18 + $0x28] sm:$0xff] }
  0x41   : > { %v589_v23 = vld [vmem:[#allocation5 + $0x340] sm:$0xff]  ;;  %746 = vmatpush.msra.mxu0 %v525_v22  ;;  %v534_v22 = vld [vmem:[#allocation5 + $0x188] sm:$0xff] }
  0x42   : > { %v649_v24 = vld [vmem:[#allocation5 + $0x520] sm:$0xff]  ;;  %811 = vmatpush.msra.mxu1 %v589_v23  ;;  %v598_v23 = vld [vmem:[#allocation5 + $0x388] sm:$0xff] }
  0x43   : > { %v713_v25 = vld [vmem:[#allocation5 + $0x720] sm:$0xff]  ;;  %877 = vmatpush.msra.mxu2 %v649_v24  ;;  %v658_v24 = vld [vmem:[#allocation5 + $0x568] sm:$0xff] }
  0x44   : > { %v521_v26 = vld [vmem:[#allocation5 + $0x120] sm:$0xff]  ;;  %942 = vmatpush.msra.mxu3 %v713_v25  ;;  %v722_v25 = vld [vmem:[#allocation5 + $0x768] sm:$0xff] }
  0x45   : > { %v585_v27 = vld [vmem:[#allocation5 + $0x320] sm:$0xff]  ;;  %747 = vmatpush.msra.mxu0 %v521_v26  ;;  %v530_v26 = vld [vmem:[#allocation5 + $0x168] sm:$0xff] }
  0x46   : > { %v645_v28 = vld [vmem:[#allocation5 + $0x500] sm:$0xff]  ;;  %812 = vmatpush.msra.mxu1 %v585_v27  ;;  %v594_v27 = vld [vmem:[#allocation5 + $0x368] sm:$0xff] }
  0x47   : > { %v709_v29 = vld [vmem:[#allocation5 + $0x700] sm:$0xff]  ;;  %878 = vmatpush.msra.mxu2 %v645_v28  ;;  %v654_v28 = vld [vmem:[#allocation5 + $0x548] sm:$0xff] }
  0x48   : > { %v517_v30 = vld [vmem:[#allocation5 + $0x100] sm:$0xff]  ;;  %943 = vmatpush.msra.mxu3 %v709_v29  ;;  %v718_v29 = vld [vmem:[#allocation5 + $0x748] sm:$0xff] }
  0x49   : > { %v581_v31 = vld [vmem:[#allocation5 + $0x300] sm:$0xff]  ;;  %748 = vmatpush.msra.mxu0 %v517_v30  ;;  %v2572_v30 = vld [vmem:[%s2529_s18 + $0x50] sm:$0xff] }
  0x4a   : > { %v641_v32 = vld [vmem:[#allocation5 + $0x4e0] sm:$0xff]  ;;  %813 = vmatpush.msra.mxu1 %v581_v31  ;;  %v2575_v31 = vld [vmem:[%s2529_s18 + $0x58] sm:$0xff] }
  0x4b   : > { %v705_v33 = vld [vmem:[#allocation5 + $0x6e0] sm:$0xff]  ;;  %879 = vmatpush.msra.mxu2 %v641_v32  ;;  %v526_v32 = vld [vmem:[#allocation5 + $0x148] sm:$0xff] }
  0x4c   : > { %v513_v34 = vld [vmem:[#allocation5 + $0xe0] sm:$0xff]  ;;  %944 = vmatpush.msra.mxu3 %v705_v33  ;;  %v590_v33 = vld [vmem:[#allocation5 + $0x348] sm:$0xff] }
  0x4d   : > { %v577_v35 = vld [vmem:[#allocation5 + $0x2e0] sm:$0xff]  ;;  %749 = vmatpush.msra.mxu0 %v513_v34 }
  0x4e   : > { %v637_v36 = vld [vmem:[#allocation5 + $0x4c0] sm:$0xff]  ;;  %814 = vmatpush.msra.mxu1 %v577_v35  ;;  %v2583_v35 = vld [vmem:[%s2529_s18 + $0x48] sm:$0xff] }
  0x4f   : > { %v701_v37 = vld [vmem:[#allocation5 + $0x6c0] sm:$0xff]  ;;  %880 = vmatpush.msra.mxu2 %v637_v36  ;;  %v650_v36 = vld [vmem:[#allocation5 + $0x528] sm:$0xff] }
  0x50   : > { %v509_v38 = vld [vmem:[#allocation5 + $0xc0] sm:$0xff]  ;;  %945 = vmatpush.msra.mxu3 %v701_v37  ;;  %v714_v37 = vld [vmem:[#allocation5 + $0x728] sm:$0xff] }
  0x51   : > { %v573_v39 = vld [vmem:[#allocation5 + $0x2c0] sm:$0xff]  ;;  %750 = vmatpush.msra.mxu0 %v509_v38  ;;  %v522_v38 = vld [vmem:[#allocation5 + $0x128] sm:$0xff] }
  0x52   : > { %v633_v40 = vld [vmem:[#allocation5 + $0x4a0] sm:$0xff]  ;;  %815 = vmatpush.msra.mxu1 %v573_v39  ;;  %v586_v39 = vld [vmem:[#allocation5 + $0x328] sm:$0xff] }
  0x53   : > { %v697_v41 = vld [vmem:[#allocation5 + $0x6a0] sm:$0xff]  ;;  %881 = vmatpush.msra.mxu2 %v633_v40  ;;  %v2588_v40 = vld [vmem:[%s2529_s18 + $0x70] sm:$0xff] }
  0x54   : > { %v505_v42 = vld [vmem:[#allocation5 + $0xa0] sm:$0xff]  ;;  %946 = vmatpush.msra.mxu3 %v697_v41  ;;  %v2591_v41 = vld [vmem:[%s2529_s18 + $0x78] sm:$0xff] }
  0x55   : > { %v569_v43 = vld [vmem:[#allocation5 + $0x2a0] sm:$0xff]  ;;  %751 = vmatpush.msra.mxu0 %v505_v42 }
  0x56   : > { %v629_v44 = vld [vmem:[#allocation5 + $0x480] sm:$0xff]  ;;  %816 = vmatpush.msra.mxu1 %v569_v43  ;;  %v2599_v43 = vld [vmem:[%s2529_s18 + $0x68] sm:$0xff] }
  0x57   : > { %v693_v45 = vld [vmem:[#allocation5 + $0x680] sm:$0xff]  ;;  %882 = vmatpush.msra.mxu2 %v629_v44  ;;  %v646_v44 = vld [vmem:[#allocation5 + $0x508] sm:$0xff] }
  0x58   : > { %v501_v46 = vld [vmem:[#allocation5 + $0x80] sm:$0xff]  ;;  %947 = vmatpush.msra.mxu3 %v693_v45  ;;  %v710_v45 = vld [vmem:[#allocation5 + $0x708] sm:$0xff] }
  0x59   : > { %v565_v47 = vld [vmem:[#allocation5 + $0x280] sm:$0xff]  ;;  %752 = vmatpush.msra.mxu0 %v501_v46  ;;  %v518_v46 = vld [vmem:[#allocation5 + $0x108] sm:$0xff] }
  0x5a   : > { %v625_v48 = vld [vmem:[#allocation5 + $0x460] sm:$0xff]  ;;  %817 = vmatpush.msra.mxu1 %v565_v47  ;;  %v582_v47 = vld [vmem:[#allocation5 + $0x308] sm:$0xff] }
  0x5b   : > { %v689_v49 = vld [vmem:[#allocation5 + $0x660] sm:$0xff]  ;;  %883 = vmatpush.msra.mxu2 %v625_v48  ;;  %v2604_v48 = vld [vmem:[%s2529_s18 + $0x90] sm:$0xff] }
  0x5c   : > { %v497_v50 = vld [vmem:[#allocation5 + $0x60] sm:$0xff]  ;;  %948 = vmatpush.msra.mxu3 %v689_v49  ;;  %v2607_v49 = vld [vmem:[%s2529_s18 + $0x98] sm:$0xff] }
  0x5d   : > { %v561_v51 = vld [vmem:[#allocation5 + $0x260] sm:$0xff]  ;;  %753 = vmatpush.msra.mxu0 %v497_v50 }
  0x5e   : > { %v621_v52 = vld [vmem:[#allocation5 + $0x440] sm:$0xff]  ;;  %818 = vmatpush.msra.mxu1 %v561_v51  ;;  %v2615_v51 = vld [vmem:[%s2529_s18 + $0x88] sm:$0xff] }
  0x5f   : > { %v685_v53 = vld [vmem:[#allocation5 + $0x640] sm:$0xff]  ;;  %884 = vmatpush.msra.mxu2 %v621_v52  ;;  %v642_v52 = vld [vmem:[#allocation5 + $0x4e8] sm:$0xff] }
  0x60   : > { %v493_v54 = vld [vmem:[#allocation5 + $0x40] sm:$0xff]  ;;  %949 = vmatpush.msra.mxu3 %v685_v53  ;;  %v706_v53 = vld [vmem:[#allocation5 + $0x6e8] sm:$0xff] }
  0x61   : > { %v557_v55 = vld [vmem:[#allocation5 + $0x240] sm:$0xff]  ;;  %754 = vmatpush.msra.mxu0 %v493_v54  ;;  %v514_v54 = vld [vmem:[#allocation5 + $0xe8] sm:$0xff] }
  0x62   : > { %v617_v56 = vld [vmem:[#allocation5 + $0x420] sm:$0xff]  ;;  %819 = vmatpush.msra.mxu1 %v557_v55  ;;  %v578_v55 = vld [vmem:[#allocation5 + $0x2e8] sm:$0xff] }
  0x63   : > { %v681_v57 = vld [vmem:[#allocation5 + $0x620] sm:$0xff]  ;;  %885 = vmatpush.msra.mxu2 %v617_v56  ;;  %v2620_v56 = vld [vmem:[%s2529_s18 + $0xb0] sm:$0xff] }
  0x64   : > { %v489_v58 = vld [vmem:[#allocation5 + $0x20] sm:$0xff]  ;;  %950 = vmatpush.msra.mxu3 %v681_v57  ;;  %v2623_v57 = vld [vmem:[%s2529_s18 + $0xb8] sm:$0xff] }
  0x65   : > { %v553_v59 = vld [vmem:[#allocation5 + $0x220] sm:$0xff]  ;;  %755 = vmatpush.msra.mxu0 %v489_v58 }
  0x66   : > { %v613_v60 = vld [vmem:[#allocation5 + $0x400] sm:$0xff]  ;;  %820 = vmatpush.msra.mxu1 %v553_v59  ;;  %v2631_v59 = vld [vmem:[%s2529_s18 + $0xa8] sm:$0xff] }
  0x67   : > { %v677_v61 = vld [vmem:[#allocation5 + $0x600] sm:$0xff]  ;;  %886 = vmatpush.msra.mxu2 %v613_v60  ;;  %v638_v60 = vld [vmem:[#allocation5 + $0x4c8] sm:$0xff] }
  0x68   : > { %951 = vmatpush.msra.mxu3 %v677_v61  ;;  %v485_v2 = vld [vmem:[#allocation5] sm:$0xff]  ;;  %887 = vmatmul.f32.vlgmr.msra.gmra.mxu2 %v2540_v62  ;;  %v702_v61 = vld [vmem:[#allocation5 + $0x6c8] sm:$0xff] }
  0x69   : > { %v549_v3 = vld [vmem:[#allocation5 + $0x200] sm:$0xff]  ;;  %952 = vmatmul.f32.vlgmr.msra.gmra.mxu3 %v2543_v63  ;;  %1131 = vmatpush.msrb.mxu2 %v674_v0  ;;  %v510_v0 = vld [vmem:[#allocation5 + $0xc8] sm:$0xff] }
  0x6a   : > { %v2548_v4 = vld [vmem:[%s2529_s18] sm:$0xff]  ;;  %1196 = vmatpush.msrb.mxu3 %v738_v1  ;;  %756 = vmatpush.msra.mxu0 %v485_v2  ;;  %v574_v1 = vld [vmem:[#allocation5 + $0x2c8] sm:$0xff]  ;;  %v2636_v2 = vld [vmem:[%s2529_s18 + $0xd0] sm:$0xff] }
  0x6b   : > { %821 = vmatpush.msra.mxu1 %v549_v3  ;;  %757 = vmatmul.f32.vlgmr.msra.gmra.mxu0 %v2548_v4  ;;  %v2564_v20 = vld [vmem:[%s2529_s18 + $0x20] sm:$0xff]  ;;  %v2639_v3 = vld [vmem:[%s2529_s18 + $0xd8] sm:$0xff] }
  0x6c   : > { %822 = vmatmul.f32.vlgmr.msra.gmra.mxu1 %v2551_v5  ;;  %1001 = vmatpush.msrb.mxu0 %v546_v6  ;;  %v2578_v34 = vld [vmem:[%s2529_s18 + $0x40] sm:$0xff] }
  0x6d   : > { %1066 = vmatpush.msrb.mxu1 %v610_v7  ;;  %1132 = vmatpush.msrb.mxu2 %v670_v8  ;;  %v2594_v42 = vld [vmem:[%s2529_s18 + $0x60] sm:$0xff]  ;;  %v2647_v7 = vld [vmem:[%s2529_s18 + $0xc8] sm:$0xff] }
  0x6e   : > { %1197 = vmatpush.msrb.mxu3 %v734_v9  ;;  %1002 = vmatpush.msrb.mxu0 %v542_v10  ;;  %v2610_v50 = vld [vmem:[%s2529_s18 + $0x80] sm:$0xff]  ;;  %v634_v8 = vld [vmem:[#allocation5 + $0x4a8] sm:$0xff] }
  0x6f   : > { %1067 = vmatpush.msrb.mxu1 %v606_v11  ;;  %1133 = vmatpush.msrb.mxu2 %v666_v12  ;;  %v2626_v58 = vld [vmem:[%s2529_s18 + $0xa0] sm:$0xff]  ;;  %v698_v9 = vld [vmem:[#allocation5 + $0x6a8] sm:$0xff]  ;;  %v2652_v12 = vld [vmem:[%s2529_s18 + $0xf0] sm:$0xff] }
  0x70   : > { %1198 = vmatpush.msrb.mxu3 %v730_v13  ;;  %890 = vmatmul.f32.gmra.mxu2 %v2556_v14  ;;  %v2642_v6 = vld [vmem:[%s2529_s18 + $0xc0] sm:$0xff]  ;;  %v506_v10 = vld [vmem:[#allocation5 + $0xa8] sm:$0xff]  ;;  %v2655_v13 = vld [vmem:[%s2529_s18 + $0xf8] sm:$0xff] }
  0x71   : > { %955 = vmatmul.f32.gmra.mxu3 %v2559_v15  ;;  %1003 = vmatpush.msrb.mxu0 %v538_v16  ;;  %v570_v11 = vld [vmem:[#allocation5 + $0x2a8] sm:$0xff]  ;;  %v2658_v16 = vld [vmem:[%s2529_s18 + $0xe0] sm:$0xff] }
  0x72   : > { %1068 = vmatpush.msrb.mxu1 %v602_v17  ;;  %1134 = vmatpush.msrb.mxu2 %v662_v18  ;;  %v2663_v17 = vld [vmem:[%s2529_s18 + $0xe8] sm:$0xff] }
  0x73   : > { %1199 = vmatpush.msrb.mxu3 %v726_v19  ;;  %760 = vmatmul.f32.gmra.mxu0 %v2564_v20  ;;  %v630_v18 = vld [vmem:[#allocation5 + $0x488] sm:$0xff] }
  0x74   : > { %825 = vmatmul.f32.gmra.mxu1 %v2567_v21  ;;  %1004 = vmatpush.msrb.mxu0 %v534_v22  ;;  %v694_v19 = vld [vmem:[#allocation5 + $0x688] sm:$0xff] }
  0x75   : > { %1069 = vmatpush.msrb.mxu1 %v598_v23  ;;  %1135 = vmatpush.msrb.mxu2 %v658_v24  ;;  %v502_v22 = vld [vmem:[#allocation5 + $0x88] sm:$0xff]  ;;  %v2668_v24 = vld [vmem:[%s2529_s18 + $0x110] sm:$0xff] }
  0x76   : > { %1200 = vmatpush.msrb.mxu3 %v722_v25  ;;  %1005 = vmatpush.msrb.mxu0 %v530_v26  ;;  %v566_v23 = vld [vmem:[#allocation5 + $0x288] sm:$0xff]  ;;  %v2671_v25 = vld [vmem:[%s2529_s18 + $0x118] sm:$0xff]  ;;  %v2674_v26 = vld [vmem:[%s2529_s18 + $0x100] sm:$0xff] }
  0x77   : > { %1070 = vmatpush.msrb.mxu1 %v594_v27  ;;  %1136 = vmatpush.msrb.mxu2 %v654_v28  ;;  %v2679_v27 = vld [vmem:[%s2529_s18 + $0x108] sm:$0xff] }
  0x78   : > { %1201 = vmatpush.msrb.mxu3 %v718_v29  ;;  %893 = vmatmul.f32.gmra.mxu2 %v2572_v30  ;;  %v626_v28 = vld [vmem:[#allocation5 + $0x468] sm:$0xff] }
  0x79   : > { %958 = vmatmul.f32.gmra.mxu3 %v2575_v31  ;;  %1006 = vmatpush.msrb.mxu0 %v526_v32  ;;  %v690_v29 = vld [vmem:[#allocation5 + $0x668] sm:$0xff] }
  0x7a   : > { %1071 = vmatpush.msrb.mxu1 %v590_v33  ;;  %1137 = vmatpush.msrb.mxu2 %v650_v36  ;;  %v498_v32 = vld [vmem:[#allocation5 + $0x68] sm:$0xff]  ;;  %v2684_v36 = vld [vmem:[%s2529_s18 + $0x130] sm:$0xff] }
  0x7b   : > { %1202 = vmatpush.msrb.mxu3 %v714_v37  ;;  %763 = vmatmul.f32.gmra.mxu0 %v2578_v34  ;;  %v562_v33 = vld [vmem:[#allocation5 + $0x268] sm:$0xff]  ;;  %v2687_v37 = vld [vmem:[%s2529_s18 + $0x138] sm:$0xff] }
  0x7c   : > { %828 = vmatmul.f32.gmra.mxu1 %v2583_v35  ;;  %1007 = vmatpush.msrb.mxu0 %v522_v38  ;;  %v2690_v38 = vld [vmem:[%s2529_s18 + $0x120] sm:$0xff] }
  0x7d   : > { %1072 = vmatpush.msrb.mxu1 %v586_v39  ;;  %1138 = vmatpush.msrb.mxu2 %v646_v44  ;;  %v2695_v39 = vld [vmem:[%s2529_s18 + $0x128] sm:$0xff] }
  0x7e   : > { %1203 = vmatpush.msrb.mxu3 %v710_v45  ;;  %1008 = vmatpush.msrb.mxu0 %v518_v46  ;;  %v622_v44 = vld [vmem:[#allocation5 + $0x448] sm:$0xff] }
  0x7f   : > { %1073 = vmatpush.msrb.mxu1 %v582_v47  ;;  %1139 = vmatpush.msrb.mxu2 %v642_v52  ;;  %v686_v45 = vld [vmem:[#allocation5 + $0x648] sm:$0xff]  ;;  %v2700_v52 = vld [vmem:[%s2529_s18 + $0x150] sm:$0xff] }
  0x80   : > { %896 = vmatmul.f32.gmra.mxu2 %v2588_v40  ;;  %1204 = vmatpush.msrb.mxu3 %v706_v53  ;;  %v494_v46 = vld [vmem:[#allocation5 + $0x48] sm:$0xff]  ;;  %v2703_v53 = vld [vmem:[%s2529_s18 + $0x158] sm:$0xff] }
  0x81   : > { %961 = vmatmul.f32.gmra.mxu3 %v2591_v41  ;;  %1009 = vmatpush.msrb.mxu0 %v514_v54  ;;  %v558_v47 = vld [vmem:[#allocation5 + $0x248] sm:$0xff]  ;;  %v2706_v54 = vld [vmem:[%s2529_s18 + $0x140] sm:$0xff] }
  0x82   : > { %1074 = vmatpush.msrb.mxu1 %v578_v55  ;;  %1140 = vmatpush.msrb.mxu2 %v638_v60  ;;  %v2711_v55 = vld [vmem:[%s2529_s18 + $0x148] sm:$0xff] }
  0x83   : > { %766 = vmatmul.f32.gmra.mxu0 %v2594_v42  ;;  %1205 = vmatpush.msrb.mxu3 %v702_v61  ;;  %v618_v60 = vld [vmem:[#allocation5 + $0x428] sm:$0xff] }
  0x84   : > { %831 = vmatmul.f32.gmra.mxu1 %v2599_v43  ;;  %1010 = vmatpush.msrb.mxu0 %v510_v0  ;;  %v682_v61 = vld [vmem:[#allocation5 + $0x628] sm:$0xff] }
  0x85   : > { %1075 = vmatpush.msrb.mxu1 %v574_v1  ;;  %1141 = vmatpush.msrb.mxu2 %v634_v8  ;;  %v490_v0 = vld [vmem:[#allocation5 + $0x28] sm:$0xff]  ;;  %v2716_v8 = vld [vmem:[%s2529_s18 + $0x170] sm:$0xff] }
  0x86   : > { %1206 = vmatpush.msrb.mxu3 %v698_v9  ;;  %1011 = vmatpush.msrb.mxu0 %v506_v10  ;;  %v554_v1 = vld [vmem:[#allocation5 + $0x228] sm:$0xff]  ;;  %v2719_v9 = vld [vmem:[%s2529_s18 + $0x178] sm:$0xff]  ;;  %v2722_v10 = vld [vmem:[%s2529_s18 + $0x160] sm:$0xff] }
  0x87   : > { %1076 = vmatpush.msrb.mxu1 %v570_v11  ;;  %1142 = vmatpush.msrb.mxu2 %v630_v18  ;;  %v2727_v11 = vld [vmem:[%s2529_s18 + $0x168] sm:$0xff] }
  0x88   : > { %899 = vmatmul.f32.gmra.mxu2 %v2604_v48  ;;  %1207 = vmatpush.msrb.mxu3 %v694_v19  ;;  %v614_v18 = vld [vmem:[#allocation5 + $0x408] sm:$0xff] }
  0x89   : > { %964 = vmatmul.f32.gmra.mxu3 %v2607_v49  ;;  %1012 = vmatpush.msrb.mxu0 %v502_v22  ;;  %v678_v19 = vld [vmem:[#allocation5 + $0x608] sm:$0xff] }
  0x8a   : > { %1077 = vmatpush.msrb.mxu1 %v566_v23  ;;  %1143 = vmatpush.msrb.mxu2 %v626_v28  ;;  %v486_v22 = vld [vmem:[#allocation5 + $0x8] sm:$0xff]  ;;  %v2732_v28 = vld [vmem:[%s2529_s18 + $0x190] sm:$0xff] }
  0x8b   : > { %769 = vmatmul.f32.gmra.mxu0 %v2610_v50  ;;  %1208 = vmatpush.msrb.mxu3 %v690_v29  ;;  %v550_v23 = vld [vmem:[#allocation5 + $0x208] sm:$0xff]  ;;  %v2735_v29 = vld [vmem:[%s2529_s18 + $0x198] sm:$0xff] }
  0x8c   : > { %834 = vmatmul.f32.gmra.mxu1 %v2615_v51  ;;  %1013 = vmatpush.msrb.mxu0 %v498_v32  ;;  %v2740_v32 = vld [vmem:[%s2529_s18 + $0x180] sm:$0xff] }
  0x8d   : > { %1078 = vmatpush.msrb.mxu1 %v562_v33  ;;  %1144 = vmatpush.msrb.mxu2 %v622_v44  ;;  %v2743_v33 = vld [vmem:[%s2529_s18 + $0x188] sm:$0xff]  ;;  %v675_v44 = vld [vmem:[#allocation5 + $0x5f0] sm:$0xff] }
  0x8e   : > { %1209 = vmatpush.msrb.mxu3 %v686_v45  ;;  %1014 = vmatpush.msrb.mxu0 %v494_v46  ;;  %v739_v45 = vld [vmem:[#allocation5 + $0x7f0] sm:$0xff] }
  0x8f   : > { %1079 = vmatpush.msrb.mxu1 %v558_v47  ;;  %1145 = vmatpush.msrb.mxu2 %v618_v60  ;;  %v547_v46 = vld [vmem:[#allocation5 + $0x1f0] sm:$0xff] }
  0x90   : > { %902 = vmatmul.f32.gmra.mxu2 %v2620_v56  ;;  %1210 = vmatpush.msrb.mxu3 %v682_v61  ;;  %v611_v47 = vld [vmem:[#allocation5 + $0x3f0] sm:$0xff]  ;;  %v2751_v61 = vld [vmem:[%s2529_s18 + $0x1b8] sm:$0xff] }
  0x91   : > { %967 = vmatmul.f32.gmra.mxu3 %v2623_v57  ;;  %1015 = vmatpush.msrb.mxu0 %v490_v0  ;;  %v2748_v60 = vld [vmem:[%s2529_s18 + $0x1b0] sm:$0xff]  ;;  %3400 = vst [vmem:[#allocation13_spill] sm:$0xff] %v2751_v61  ;;  %v2756_v0 = vld [vmem:[%s2529_s18 + $0x1a0] sm:$0xff] }
  0x92   : > { %1080 = vmatpush.msrb.mxu1 %v554_v1  ;;  %1146 = vmatpush.msrb.mxu2 %v614_v18  ;;  %3399 = vst [vmem:[#allocation12_spill] sm:$0xff] %v2748_v60  ;;  %v2759_v1 = vld [vmem:[%s2529_s18 + $0x1a8] sm:$0xff]  ;;  %v671_v18 = vld [vmem:[#allocation5 + $0x5d0] sm:$0xff] }
  0x93   : > { %772 = vmatmul.f32.gmra.mxu0 %v2626_v58  ;;  %1211 = vmatpush.msrb.mxu3 %v678_v19  ;;  %3401 = vst [vmem:[#allocation14_spill] sm:$0xff] %v2756_v0  ;;  %v735_v19 = vld [vmem:[#allocation5 + $0x7d0] sm:$0xff] }
  0x94   : > { %837 = vmatmul.f32.gmra.mxu1 %v2631_v59  ;;  %1016 = vmatpush.msrb.mxu0 %v486_v22  ;;  %3402 = vst [vmem:[#allocation15_spill] sm:$0xff] %v2759_v1  ;;  %v543_v22 = vld [vmem:[#allocation5 + $0x1d0] sm:$0xff] }
  0x95   : > { %1081 = vmatpush.msrb.mxu1 %v550_v23  ;;  %1391 = vmatpush.msra.mxu2 %v675_v44  ;;  %v607_v23 = vld [vmem:[#allocation5 + $0x3d0] sm:$0xff] }
  0x96   : > { %1456 = vmatpush.msra.mxu3 %v739_v45  ;;  %1261 = vmatpush.msra.mxu0 %v547_v46  ;;  %v2764_v44 = vld [vmem:[%s2529_s18 + $0x1d0] sm:$0xff]  ;;  %v2767_v45 = vld [vmem:[%s2529_s18 + $0x1d8] sm:$0xff]  ;;  %v2772_v46 = vld [vmem:[%s2529_s18 + $0x1c0] sm:$0xff] }
  0x97   : > { %1326 = vmatpush.msra.mxu1 %v611_v47  ;;  %1392 = vmatpush.msra.mxu2 %v671_v18  ;;  %3403 = vst [vmem:[#allocation16_spill] sm:$0xff] %v2764_v44  ;;  %v2775_v47 = vld [vmem:[%s2529_s18 + $0x1c8] sm:$0xff]  ;;  %v667_v18 = vld [vmem:[#allocation5 + $0x5b0] sm:$0xff] }
  0x98   : > { %905 = vmatmul.f32.gmra.mxu2 %v2636_v2  ;;  %1457 = vmatpush.msra.mxu3 %v735_v19  ;;  %3404 = vst [vmem:[#allocation17_spill] sm:$0xff] %v2767_v45  ;;  %v731_v19 = vld [vmem:[#allocation5 + $0x7b0] sm:$0xff] }
  0x99   : > { %970 = vmatmul.f32.gmra.mxu3 %v2639_v3  ;;  %1262 = vmatpush.msra.mxu0 %v543_v22  ;;  %3405 = vst [vmem:[#allocation18_spill] sm:$0xff] %v2772_v46  ;;  %v539_v22 = vld [vmem:[#allocation5 + $0x1b0] sm:$0xff] }
  0x9a   : > { %1327 = vmatpush.msra.mxu1 %v607_v23  ;;  %3406 = vst [vmem:[#allocation19_spill] sm:$0xff] %v2775_v47  ;;  %1393 = vmatpush.msra.mxu2 %v667_v18  ;;  %v603_v23 = vld [vmem:[#allocation5 + $0x3b0] sm:$0xff] }
  0x9b   : > { %775 = vmatmul.f32.gmra.mxu0 %v2642_v6  ;;  %1458 = vmatpush.msra.mxu3 %v731_v19  ;;  %v535_v18 = vld [vmem:[#allocation5 + $0x190] sm:$0xff] }
  0x9c   : > { %840 = vmatmul.f32.gmra.mxu1 %v2647_v7  ;;  %1263 = vmatpush.msra.mxu0 %v539_v22  ;;  %v599_v19 = vld [vmem:[#allocation5 + $0x390] sm:$0xff] }
  0x9d   : > { %1328 = vmatpush.msra.mxu1 %v603_v23 }
  0x9e   : > { %1264 = vmatpush.msra.mxu0 %v535_v18 }
  0x9f   : > { %1329 = vmatpush.msra.mxu1 %v599_v19 }
  0xa0   : > { %908 = vmatmul.f32.gmra.mxu2 %v2652_v12 }
  0xa1   : > { %973 = vmatmul.f32.gmra.mxu3 %v2655_v13 }
  0xa3   : > { %778 = vmatmul.f32.gmra.mxu0 %v2658_v16 }
  0xa4   : > { %843 = vmatmul.f32.gmra.mxu1 %v2663_v17 }
  0xa8   : > { %911 = vmatmul.f32.gmra.mxu2 %v2668_v24 }
  0xa9   : > { %976 = vmatmul.f32.gmra.mxu3 %v2671_v25 }
  0xab   : > { %781 = vmatmul.f32.gmra.mxu0 %v2674_v26 }
  0xac   : > { %846 = vmatmul.f32.gmra.mxu1 %v2679_v27 }
  0xb0   : > { %914 = vmatmul.f32.gmra.mxu2 %v2684_v36 }
  0xb1   : > { %979 = vmatmul.f32.gmra.mxu3 %v2687_v37 }
  0xb3   : > { %784 = vmatmul.f32.gmra.mxu0 %v2690_v38 }
  0xb4   : > { %849 = vmatmul.f32.gmra.mxu1 %v2695_v39 }
  0xb8   : > { %917 = vmatmul.f32.gmra.mxu2 %v2700_v52 }
  0xb9   : > { %982 = vmatmul.f32.gmra.mxu3 %v2703_v53 }
  0xbb   : > { %787 = vmatmul.f32.gmra.mxu0 %v2706_v54 }
  0xbc   : > { %852 = vmatmul.f32.gmra.mxu1 %v2711_v55 }
  0xc0   : > { %920 = vmatmul.f32.gmra.mxu2 %v2716_v8 }
  0xc1   : > { %985 = vmatmul.f32.gmra.mxu3 %v2719_v9 }
  0xc3   : > { %790 = vmatmul.f32.gmra.mxu0 %v2722_v10 }
  0xc4   : > { %855 = vmatmul.f32.gmra.mxu1 %v2727_v11 }
  0xc8   : > { %923 = vmatmul.f32.gmra.mxu2 %v2732_v28 }
  0xc9   : > { %988 = vmatmul.f32.gmra.mxu3 %v2735_v29 }
  0xcb   : > { %793 = vmatmul.f32.gmra.mxu0 %v2740_v32 }
  0xcc   : > { %858 = vmatmul.f32.gmra.mxu1 %v2743_v33 }
  0xd0   : > { %926 = vmatmul.f32.gmra.mxu2 %v2748_v60  ;;  %v723_v60 = vld [vmem:[#allocation5 + $0x770] sm:$0xff] }
  0xd1   : > { %991 = vmatmul.f32.gmra.mxu3 %v2751_v61  ;;  %v659_v61 = vld [vmem:[#allocation5 + $0x570] sm:$0xff] }
  0xd3   : > { %796 = vmatmul.f32.gmra.mxu0 %v2756_v0  ;;  %v2791_v0 = vld [vmem:[%s2529_s18 + $0x1e8] sm:$0xff] }
  0xd4   : > { %861 = vmatmul.f32.gmra.mxu1 %v2759_v1  ;;  %v2780_v1 = vld [vmem:[%s2529_s18 + $0x1f0] sm:$0xff] }
  0xd5   : > { %3407 = vst [vmem:[#allocation20_spill] sm:$0xff] %v2780_v1 }
  0xd8   : > { %929 = vmatmul.f32.gmra.mxu2 %v2764_v44  ;;  %v2783_v44 = vld [vmem:[%s2529_s18 + $0x1f8] sm:$0xff] }
  0xd9   : > { %994 = vmatmul.f32.gmra.mxu3 %v2767_v45  ;;  %3408 = vst [vmem:[#allocation21_spill] sm:$0xff] %v2783_v44  ;;  %v2788_v45 = vld [vmem:[%s2529_s18 + $0x1e0] sm:$0xff] }
  0xda   : > { %3409 = vst [vmem:[#allocation22_spill] sm:$0xff] %v2788_v45 }
  0xdb   : > { %799 = vmatmul.f32.gmra.mxu0 %v2772_v46  ;;  %v663_v46 = vld [vmem:[#allocation5 + $0x590] sm:$0xff] }
  0xdc   : > { %864 = vmatmul.f32.gmra.mxu1 %v2775_v47  ;;  %v727_v47 = vld [vmem:[#allocation5 + $0x790] sm:$0xff]  ;;  %1394 = vmatpush.msra.mxu2 %v663_v46 }
  0xdd   : > { %1459 = vmatpush.msra.mxu3 %v727_v47 }
  0xde   : > { %1395 = vmatpush.msra.mxu2 %v659_v61  ;;  %v719_v61 = vld [vmem:[#allocation5 + $0x750] sm:$0xff] }
  0xdf   : > { %1460 = vmatpush.msra.mxu3 %v723_v60  ;;  %v655_v60 = vld [vmem:[#allocation5 + $0x550] sm:$0xff] }
  0xe0   : > { %932 = vmatmul.f32.gmra.mxu2 %v2780_v1  ;;  %v2797_v1 = vld [vmem:[#allocation7] sm:$0xf] }
  0xe1   : > { %997 = vmatmul.f32.gmra.mxu3 %v2783_v44  ;;  %v2802_v18 = vperm.slane %v2797_v1, 0  ;;  %1396 = vmatpush.msra.mxu2 %v655_v60  ;;  %v523_v60 = vld [vmem:[#allocation5 + $0x130] sm:$0xff] }
  0xe2   : > { %1461 = vmatpush.msra.mxu3 %v719_v61 }
  0xe3   : > { %802 = vmatmul.f32.gmra.mxu0 %v2788_v45 }
  0xe4   : > { %867 = vmatmul.f32.gmra.mxu1 %v2791_v0 }
  0xe8   : > { %1147 = vmatmul.f32.vlgmr.msrb.gmra.mxu2 %v2540_v62  ;;  %v758_v22 = vpop.f32.mrf.mxu0  ;;  %v531_v62 = vld [vmem:[#allocation5 + $0x170] sm:$0xff] }
  0xe9   : > { %v823_v23 = vpop.f32.mrf.mxu1  ;;  %1212 = vmatmul.f32.vlgmr.msrb.gmra.mxu3 %v2543_v63  ;;  %v595_v63 = vld [vmem:[#allocation5 + $0x370] sm:$0xff]  ;;  %1265 = vmatpush.msra.mxu0 %v531_v62 }
  0xea   : > { %v824_v44 = vadd.f32 %v823_v23, %v758_v22  ;;  %1330 = vmatpush.msra.mxu1 %v595_v63 }
  0xeb   : > { %v888_v45 = vpop.f32.mrf.mxu2  ;;  %1017 = vmatmul.f32.vlgmr.msrb.gmra.mxu0 %v2548_v4 }
  0xec   : > { %1082 = vmatmul.f32.vlgmr.msrb.gmra.mxu1 %v2551_v5  ;;  %v953_v46 = vpop.f32.mrf.mxu3  ;;  %v889_v47 = vadd.f32 %v888_v45, %v824_v44 }
  0xee   : > { %v954_v19 = vadd.f32 %v953_v46, %v889_v47  ;;  %v527_v46 = vld [vmem:[#allocation5 + $0x150] sm:$0xff] }
  0xef   : > { %1266 = vmatpush.msra.mxu0 %v527_v46 }
  0xf0   : > { %v1781_v22 = vadd.f32 %v954_v19, %v2802_v18  ;;  %1150 = vmatmul.f32.gmra.mxu2 %v2556_v14  ;;  %v761_v4 = vpop.f32.mrf.mxu0 }
  0xf1   : > { %v826_v23 = vpop.f32.mrf.mxu1  ;;  %1215 = vmatmul.f32.gmra.mxu3 %v2559_v15  ;;  %v591_v15 = vld [vmem:[#allocation5 + $0x350] sm:$0xff]  ;;  %1267 = vmatpush.msra.mxu0 %v523_v60 }
  0xf2   : > { %v827_v5 = vadd.f32 %v826_v23, %v761_v4  ;;  %1845 = vst [vmem:[%s2809_s20] sm:$0xff] %v1781_v22  ;;  %1331 = vmatpush.msra.mxu1 %v591_v15  ;;  %v715_v22 = vld [vmem:[#allocation5 + $0x730] sm:$0xff] }
  0xf3   : > { %v891_v44 = vpop.f32.mrf.mxu2  ;;  %1020 = vmatmul.f32.gmra.mxu0 %v2564_v20  ;;  %1462 = vmatpush.msra.mxu3 %v715_v22 }
  0xf4   : > { %1085 = vmatmul.f32.gmra.mxu1 %v2567_v21  ;;  %v956_v45 = vpop.f32.mrf.mxu3  ;;  %v892_v14 = vadd.f32 %v891_v44, %v827_v5  ;;  %v651_v21 = vld [vmem:[#allocation5 + $0x530] sm:$0xff] }
  0xf5   : > { %1397 = vmatpush.msra.mxu2 %v651_v21  ;;  %v707_v21 = vld [vmem:[#allocation5 + $0x6f0] sm:$0xff] }
  0xf6   : > { %v957_v47 = vadd.f32 %v956_v45, %v892_v14  ;;  %v711_v14 = vld [vmem:[#allocation5 + $0x710] sm:$0xff] }
  0xf7   : > { %1463 = vmatpush.msra.mxu3 %v711_v14 }
  0xf8   : > { %v1785_v62 = vadd.f32 %v957_v47, %v2802_v18  ;;  %1153 = vmatmul.f32.gmra.mxu2 %v2572_v30  ;;  %v764_v63 = vpop.f32.mrf.mxu0  ;;  %v587_v30 = vld [vmem:[#allocation5 + $0x330] sm:$0xff] }
  0xf9   : > { %v829_v19 = vpop.f32.mrf.mxu1  ;;  %1218 = vmatmul.f32.gmra.mxu3 %v2575_v31  ;;  %1332 = vmatpush.msra.mxu1 %v587_v30 }
  0xfa   : > { %v830_v20 = vadd.f32 %v829_v19, %v764_v63  ;;  %1849 = vst [vmem:[%s2809_s20 + $0x20] sm:$0xff] %v1785_v62  ;;  %v519_v62 = vld [vmem:[#allocation5 + $0x110] sm:$0xff]  ;;  %1464 = vmatpush.msra.mxu3 %v707_v21 }
  0xfb   : > { %v894_v4 = vpop.f32.mrf.mxu2  ;;  %1023 = vmatmul.f32.gmra.mxu0 %v2578_v34 }
  0xfc   : > { %1088 = vmatmul.f32.gmra.mxu1 %v2583_v35  ;;  %v959_v23 = vpop.f32.mrf.mxu3  ;;  %v895_v5 = vadd.f32 %v894_v4, %v830_v20  ;;  %v647_v35 = vld [vmem:[#allocation5 + $0x510] sm:$0xff]  ;;  %1268 = vmatpush.msra.mxu0 %v519_v62 }
  0xfd   : > { %1398 = vmatpush.msra.mxu2 %v647_v35  ;;  %v511_v35 = vld [vmem:[#allocation5 + $0xd0] sm:$0xff] }
  0xfe   : > { %v960_v61 = vadd.f32 %v959_v23, %v895_v5  ;;  %v515_v5 = vld [vmem:[#allocation5 + $0xf0] sm:$0xff] }
  0xff   : > { %1269 = vmatpush.msra.mxu0 %v515_v5 }
 0x100   : > { %v1789_v31 = vadd.f32 %v960_v61, %v2802_v18  ;;  %1156 = vmatmul.f32.gmra.mxu2 %v2588_v40  ;;  %v767_v44 = vpop.f32.mrf.mxu0  ;;  %v583_v40 = vld [vmem:[#allocation5 + $0x310] sm:$0xff] }
 0x101   : > { %v832_v45 = vpop.f32.mrf.mxu1  ;;  %1221 = vmatmul.f32.gmra.mxu3 %v2591_v41  ;;  %1333 = vmatpush.msra.mxu1 %v583_v40 }
 0x102   : > { %v833_v34 = vadd.f32 %v832_v45, %v767_v44  ;;  %1853 = vst [vmem:[%s2809_s20 + $0x40] sm:$0xff] %v1789_v31  ;;  %v703_v31 = vld [vmem:[#allocation5 + $0x6d0] sm:$0xff]  ;;  %1270 = vmatpush.msra.mxu0 %v511_v35 }
 0x103   : > { %v897_v46 = vpop.f32.mrf.mxu2  ;;  %1026 = vmatmul.f32.gmra.mxu0 %v2594_v42  ;;  %1465 = vmatpush.msra.mxu3 %v703_v31 }
 0x104   : > { %1091 = vmatmul.f32.gmra.mxu1 %v2599_v43  ;;  %v962_v15 = vpop.f32.mrf.mxu3  ;;  %v898_v47 = vadd.f32 %v897_v46, %v833_v34  ;;  %v643_v43 = vld [vmem:[#allocation5 + $0x4f0] sm:$0xff] }
 0x105   : > { %1399 = vmatpush.msra.mxu2 %v643_v43  ;;  %v695_v43 = vld [vmem:[#allocation5 + $0x690] sm:$0xff] }
 0x106   : > { %v963_v63 = vadd.f32 %v962_v15, %v898_v47  ;;  %v699_v47 = vld [vmem:[#allocation5 + $0x6b0] sm:$0xff] }
 0x107   : > { %1466 = vmatpush.msra.mxu3 %v699_v47 }
 0x108   : > { %v1793_v41 = vadd.f32 %v963_v63, %v2802_v18  ;;  %1159 = vmatmul.f32.gmra.mxu2 %v2604_v48  ;;  %v770_v19 = vpop.f32.mrf.mxu0  ;;  %v579_v48 = vld [vmem:[#allocation5 + $0x2f0] sm:$0xff] }
 0x109   : > { %v835_v20 = vpop.f32.mrf.mxu1  ;;  %1224 = vmatmul.f32.gmra.mxu3 %v2607_v49  ;;  %1334 = vmatpush.msra.mxu1 %v579_v48 }
 0x10a   : > { %v836_v42 = vadd.f32 %v835_v20, %v770_v19  ;;  %1857 = vst [vmem:[%s2809_s20 + $0x60] sm:$0xff] %v1793_v41  ;;  %v507_v41 = vld [vmem:[#allocation5 + $0xb0] sm:$0xff]  ;;  %1467 = vmatpush.msra.mxu3 %v695_v43 }
 0x10b   : > { %v900_v22 = vpop.f32.mrf.mxu2  ;;  %1029 = vmatmul.f32.gmra.mxu0 %v2610_v50 }
 0x10c   : > { %1094 = vmatmul.f32.gmra.mxu1 %v2615_v51  ;;  %v965_v4 = vpop.f32.mrf.mxu3  ;;  %v901_v23 = vadd.f32 %v900_v22, %v836_v42  ;;  %v639_v51 = vld [vmem:[#allocation5 + $0x4d0] sm:$0xff]  ;;  %1271 = vmatpush.msra.mxu0 %v507_v41 }
 0x10d   : > { %1400 = vmatpush.msra.mxu2 %v639_v51  ;;  %v499_v51 = vld [vmem:[#allocation5 + $0x70] sm:$0xff] }
 0x10e   : > { %v966_v60 = vadd.f32 %v965_v4, %v901_v23  ;;  %v503_v23 = vld [vmem:[#allocation5 + $0x90] sm:$0xff] }
 0x10f   : > { %1272 = vmatpush.msra.mxu0 %v503_v23 }
 0x110   : > { %v1797_v49 = vadd.f32 %v966_v60, %v2802_v18  ;;  %1162 = vmatmul.f32.gmra.mxu2 %v2620_v56  ;;  %v773_v30 = vpop.f32.mrf.mxu0  ;;  %v575_v56 = vld [vmem:[#allocation5 + $0x2d0] sm:$0xff] }
 0x111   : > { %v838_v61 = vpop.f32.mrf.mxu1  ;;  %1227 = vmatmul.f32.gmra.mxu3 %v2623_v57  ;;  %1335 = vmatpush.msra.mxu1 %v575_v56 }
 0x112   : > { %v839_v50 = vadd.f32 %v838_v61, %v773_v30  ;;  %1861 = vst [vmem:[%s2809_s20 + $0x80] sm:$0xff] %v1797_v49  ;;  %v691_v49 = vld [vmem:[#allocation5 + $0x670] sm:$0xff]  ;;  %1273 = vmatpush.msra.mxu0 %v499_v51  ;;  %v3413_v51 = vld [vmem:[#allocation15_spill] sm:$0xff] }
 0x113   : > { %v903_v44 = vpop.f32.mrf.mxu2  ;;  %1032 = vmatmul.f32.gmra.mxu0 %v2626_v58  ;;  %1468 = vmatpush.msra.mxu3 %v691_v49  ;;  %v3411_v49 = vld [vmem:[#allocation13_spill] sm:$0xff] }
 0x114   : > { %1097 = vmatmul.f32.gmra.mxu1 %v2631_v59  ;;  %v968_v45 = vpop.f32.mrf.mxu3  ;;  %v904_v34 = vadd.f32 %v903_v44, %v839_v50  ;;  %v635_v59 = vld [vmem:[#allocation5 + $0x4b0] sm:$0xff] }
 0x115   : > { %1401 = vmatpush.msra.mxu2 %v635_v59  ;;  %v683_v59 = vld [vmem:[#allocation5 + $0x630] sm:$0xff] }
 0x116   : > { %v969_v14 = vadd.f32 %v968_v45, %v904_v34  ;;  %v687_v34 = vld [vmem:[#allocation5 + $0x650] sm:$0xff] }
 0x117   : > { %1469 = vmatpush.msra.mxu3 %v687_v34 }
 0x118   : > { %v1801_v57 = vadd.f32 %v969_v14, %v2802_v18  ;;  %1165 = vmatmul.f32.gmra.mxu2 %v2636_v2  ;;  %v776_v46 = vpop.f32.mrf.mxu0  ;;  %v571_v2 = vld [vmem:[#allocation5 + $0x2b0] sm:$0xff] }
 0x119   : > { %v841_v15 = vpop.f32.mrf.mxu1  ;;  %1230 = vmatmul.f32.gmra.mxu3 %v2639_v3  ;;  %1336 = vmatpush.msra.mxu1 %v571_v2 }
 0x11a   : > { %v842_v58 = vadd.f32 %v841_v15, %v776_v46  ;;  %1865 = vst [vmem:[%s2809_s20 + $0xa0] sm:$0xff] %v1801_v57  ;;  %v495_v57 = vld [vmem:[#allocation5 + $0x50] sm:$0xff]  ;;  %1470 = vmatpush.msra.mxu3 %v683_v59  ;;  %v604_v59 = vld [vmem:[#allocation5 + $0x3b8] sm:$0xff] }
 0x11b   : > { %v906_v62 = vpop.f32.mrf.mxu2  ;;  %1035 = vmatmul.f32.gmra.mxu0 %v2642_v6 }
 0x11c   : > { %1100 = vmatmul.f32.gmra.mxu1 %v2647_v7  ;;  %v971_v40 = vpop.f32.mrf.mxu3  ;;  %v907_v63 = vadd.f32 %v906_v62, %v842_v58  ;;  %v631_v7 = vld [vmem:[#allocation5 + $0x490] sm:$0xff]  ;;  %1274 = vmatpush.msra.mxu0 %v495_v57  ;;  %v668_v57 = vld [vmem:[#allocation5 + $0x5b8] sm:$0xff] }
 0x11d   : > { %1402 = vmatpush.msra.mxu2 %v631_v7  ;;  %v487_v7 = vld [vmem:[#allocation5 + $0x10] sm:$0xff] }
 0x11e   : > { %v972_v19 = vadd.f32 %v971_v40, %v907_v63  ;;  %v491_v63 = vld [vmem:[#allocation5 + $0x30] sm:$0xff] }
 0x11f   : > { %1275 = vmatpush.msra.mxu0 %v491_v63 }
 0x120   : > { %v1805_v3 = vadd.f32 %v972_v19, %v2802_v18  ;;  %1168 = vmatmul.f32.gmra.mxu2 %v2652_v12  ;;  %v779_v20 = vpop.f32.mrf.mxu0  ;;  %v567_v12 = vld [vmem:[#allocation5 + $0x290] sm:$0xff] }
 0x121   : > { %v844_v42 = vpop.f32.mrf.mxu1  ;;  %1233 = vmatmul.f32.gmra.mxu3 %v2655_v13  ;;  %1337 = vmatpush.msra.mxu1 %v567_v12 }
 0x122   : > { %v845_v6 = vadd.f32 %v844_v42, %v779_v20  ;;  %1869 = vst [vmem:[%s2809_s20 + $0xc0] sm:$0xff] %v1805_v3  ;;  %v679_v3 = vld [vmem:[#allocation5 + $0x610] sm:$0xff]  ;;  %1276 = vmatpush.msra.mxu0 %v487_v7 }
 0x123   : > { %v909_v21 = vpop.f32.mrf.mxu2  ;;  %1038 = vmatmul.f32.gmra.mxu0 %v2658_v16  ;;  %1471 = vmatpush.msra.mxu3 %v679_v3 }
 0x124   : > { %1103 = vmatmul.f32.gmra.mxu1 %v2663_v17  ;;  %v974_v22 = vpop.f32.mrf.mxu3  ;;  %v910_v4 = vadd.f32 %v909_v21, %v845_v6  ;;  %v627_v17 = vld [vmem:[#allocation5 + $0x470] sm:$0xff] }
 0x125   : > { %1403 = vmatpush.msra.mxu2 %v627_v17 }
 0x126   : > { %v975_v5 = vadd.f32 %v974_v22, %v910_v4  ;;  %v740_v4 = vld [vmem:[#allocation5 + $0x7f8] sm:$0xff] }
 0x127   : > { %1716 = vmatpush.msrb.mxu3 %v740_v4 }
 0x128   : > { %v1809_v13 = vadd.f32 %v975_v5, %v2802_v18  ;;  %1171 = vmatmul.f32.gmra.mxu2 %v2668_v24  ;;  %v782_v48 = vpop.f32.mrf.mxu0  ;;  %v563_v24 = vld [vmem:[#allocation5 + $0x270] sm:$0xff] }
 0x129   : > { %v847_v60 = vpop.f32.mrf.mxu1  ;;  %1236 = vmatmul.f32.gmra.mxu3 %v2671_v25  ;;  %1338 = vmatpush.msra.mxu1 %v563_v24 }
 0x12a   : > { %v848_v16 = vadd.f32 %v847_v60, %v782_v48  ;;  %1873 = vst [vmem:[%s2809_s20 + $0xe0] sm:$0xff] %v1809_v13  ;;  %v548_v13 = vld [vmem:[#allocation5 + $0x1f8] sm:$0xff]  ;;  %v3410_v60 = vld [vmem:[#allocation12_spill] sm:$0xff] }
 0x12b   : > { %v912_v30 = vpop.f32.mrf.mxu2  ;;  %1041 = vmatmul.f32.gmra.mxu0 %v2674_v26 }
 0x12c   : > { %1106 = vmatmul.f32.gmra.mxu1 %v2679_v27  ;;  %v977_v61 = vpop.f32.mrf.mxu3  ;;  %v913_v50 = vadd.f32 %v912_v30, %v848_v16  ;;  %v623_v27 = vld [vmem:[#allocation5 + $0x450] sm:$0xff]  ;;  %1521 = vmatpush.msrb.mxu0 %v548_v13  ;;  %v736_v30 = vld [vmem:[#allocation5 + $0x7d8] sm:$0xff]  ;;  %v2917_v13 = vperm.slane %v2797_v1, 1 }
 0x12d   : > { %1404 = vmatpush.msra.mxu2 %v623_v27  ;;  %1717 = vmatpush.msrb.mxu3 %v736_v30  ;;  %v3414_v27 = vld [vmem:[#allocation16_spill] sm:$0xff]  ;;  %v2925_v1 = vld [vmem:[%s2529_s18 + $0x38] sm:$0xff] }
 0x12e   : > { %v978_v31 = vadd.f32 %v977_v61, %v913_v50  ;;  %v3412_v50 = vld [vmem:[#allocation14_spill] sm:$0xff] }
 0x12f   : > { %v720_v30 = vld [vmem:[#allocation5 + $0x758] sm:$0xff] }
 0x130   : > { %v1813_v25 = vadd.f32 %v978_v31, %v2802_v18  ;;  %1174 = vmatmul.f32.gmra.mxu2 %v2684_v36  ;;  %v785_v44 = vpop.f32.mrf.mxu0  ;;  %v559_v36 = vld [vmem:[#allocation5 + $0x250] sm:$0xff] }
 0x131   : > { %v850_v45 = vpop.f32.mrf.mxu1  ;;  %1239 = vmatmul.f32.gmra.mxu3 %v2687_v37  ;;  %1339 = vmatpush.msra.mxu1 %v559_v36  ;;  %v732_v36 = vld [vmem:[#allocation5 + $0x7b8] sm:$0xff] }
 0x132   : > { %v851_v26 = vadd.f32 %v850_v45, %v785_v44  ;;  %1877 = vst [vmem:[%s2809_s20 + $0x100] sm:$0xff] %v1813_v25  ;;  %v544_v25 = vld [vmem:[#allocation5 + $0x1d8] sm:$0xff]  ;;  %1718 = vmatpush.msrb.mxu3 %v732_v36 }
 0x133   : > { %v915_v35 = vpop.f32.mrf.mxu2  ;;  %1044 = vmatmul.f32.gmra.mxu0 %v2690_v38  ;;  %v608_v44 = vld [vmem:[#allocation5 + $0x3d8] sm:$0xff] }
 0x134   : > { %1109 = vmatmul.f32.gmra.mxu1 %v2695_v39  ;;  %v980_v56 = vpop.f32.mrf.mxu3  ;;  %v916_v14 = vadd.f32 %v915_v35, %v851_v26  ;;  %v619_v39 = vld [vmem:[#allocation5 + $0x430] sm:$0xff]  ;;  %1522 = vmatpush.msrb.mxu0 %v544_v25  ;;  %v528_v25 = vld [vmem:[#allocation5 + $0x158] sm:$0xff] }
 0x135   : > { %1405 = vmatpush.msra.mxu2 %v619_v39  ;;  %v540_v39 = vld [vmem:[#allocation5 + $0x1b8] sm:$0xff] }
 0x136   : > { %v981_v46 = vadd.f32 %v980_v56, %v916_v14  ;;  %v3415_v56 = vld [vmem:[#allocation17_spill] sm:$0xff]  ;;  %1523 = vmatpush.msrb.mxu0 %v540_v39  ;;  %v716_v36 = vld [vmem:[#allocation5 + $0x738] sm:$0xff] }
 0x137   : > { %v524_v39 = vld [vmem:[#allocation5 + $0x138] sm:$0xff] }
 0x138   : > { %v1817_v37 = vadd.f32 %v981_v46, %v2802_v18  ;;  %1177 = vmatmul.f32.gmra.mxu2 %v2700_v52  ;;  %v788_v15 = vpop.f32.mrf.mxu0  ;;  %v555_v52 = vld [vmem:[#allocation5 + $0x230] sm:$0xff] }
 0x139   : > { %v853_v58 = vpop.f32.mrf.mxu1  ;;  %1242 = vmatmul.f32.gmra.mxu3 %v2703_v53  ;;  %1340 = vmatpush.msra.mxu1 %v555_v52 }
 0x13a   : > { %v854_v38 = vadd.f32 %v853_v58, %v788_v15  ;;  %1881 = vst [vmem:[%s2809_s20 + $0x120] sm:$0xff] %v1817_v37  ;;  %v3416_v37 = vld [vmem:[#allocation18_spill] sm:$0xff]  ;;  %v3417_v15 = vld [vmem:[#allocation19_spill] sm:$0xff] }
 0x13b   : > { %v918_v47 = vpop.f32.mrf.mxu2  ;;  %1047 = vmatmul.f32.gmra.mxu0 %v2706_v54 }
 0x13c   : > { %1112 = vmatmul.f32.gmra.mxu1 %v2711_v55  ;;  %v983_v62 = vpop.f32.mrf.mxu3  ;;  %v919_v40 = vadd.f32 %v918_v47, %v854_v38  ;;  %v615_v55 = vld [vmem:[#allocation5 + $0x410] sm:$0xff] }
 0x13d   : > { %1406 = vmatpush.msra.mxu2 %v615_v55  ;;  %v3420_v55 = vld [vmem:[#allocation22_spill] sm:$0xff] }
 0x13e   : > { %v984_v41 = vadd.f32 %v983_v62, %v919_v40  ;;  %v3418_v40 = vld [vmem:[#allocation20_spill] sm:$0xff] }
 0x140   : > { %v1821_v53 = vadd.f32 %v984_v41, %v2802_v18  ;;  %1180 = vmatmul.f32.gmra.mxu2 %v2716_v8  ;;  %v791_v2 = vpop.f32.mrf.mxu0  ;;  %v551_v8 = vld [vmem:[#allocation5 + $0x210] sm:$0xff] }
 0x141   : > { %v856_v19 = vpop.f32.mrf.mxu1  ;;  %1245 = vmatmul.f32.gmra.mxu3 %v2719_v9  ;;  %1341 = vmatpush.msra.mxu1 %v551_v8  ;;  %v3419_v41 = vld [vmem:[#allocation21_spill] sm:$0xff] }
 0x142   : > { %v857_v54 = vadd.f32 %v856_v19, %v791_v2  ;;  %1885 = vst [vmem:[%s2809_s20 + $0x140] sm:$0xff] %v1821_v53  ;;  %v664_v2 = vld [vmem:[#allocation5 + $0x598] sm:$0xff] }
 0x143   : > { %v921_v20 = vpop.f32.mrf.mxu2  ;;  %1050 = vmatmul.f32.gmra.mxu0 %v2722_v10  ;;  %v728_v19 = vld [vmem:[#allocation5 + $0x798] sm:$0xff] }
 0x144   : > { %1115 = vmatmul.f32.gmra.mxu1 %v2727_v11  ;;  %v986_v42 = vpop.f32.mrf.mxu3  ;;  %v922_v6 = vadd.f32 %v921_v20, %v857_v54  ;;  %v676_v11 = vld [vmem:[#allocation5 + $0x5f8] sm:$0xff]  ;;  %1719 = vmatpush.msrb.mxu3 %v728_v19 }
 0x145   : > { %1651 = vmatpush.msrb.mxu2 %v676_v11  ;;  %v724_v11 = vld [vmem:[#allocation5 + $0x778] sm:$0xff] }
 0x146   : > { %v987_v43 = vadd.f32 %v986_v42, %v922_v6  ;;  %v536_v42 = vld [vmem:[#allocation5 + $0x198] sm:$0xff]  ;;  %1720 = vmatpush.msrb.mxu3 %v724_v11 }
 0x147   : > { %v600_v6 = vld [vmem:[#allocation5 + $0x398] sm:$0xff]  ;;  %1524 = vmatpush.msrb.mxu0 %v536_v42 }
 0x148   : > { %v1825_v9 = vadd.f32 %v987_v43, %v2802_v18  ;;  %1183 = vmatmul.f32.gmra.mxu2 %v2732_v28  ;;  %v794_v21 = vpop.f32.mrf.mxu0  ;;  %v612_v28 = vld [vmem:[#allocation5 + $0x3f8] sm:$0xff]  ;;  %v2900_v43 = vld [vmem:[%s2529_s18 + $0x10] sm:$0xff]  ;;  %1721 = vmatpush.msrb.mxu3 %v720_v30 }
 0x149   : > { %v859_v22 = vpop.f32.mrf.mxu1  ;;  %1248 = vmatmul.f32.gmra.mxu3 %v2735_v29  ;;  %1586 = vmatpush.msrb.mxu1 %v612_v28  ;;  %v532_v28 = vld [vmem:[#allocation5 + $0x178] sm:$0xff] }
 0x14a   : > { %v860_v10 = vadd.f32 %v859_v22, %v794_v21  ;;  %1889 = vst [vmem:[%s2809_s20 + $0x160] sm:$0xff] %v1825_v9  ;;  %v2904_v21 = vld [vmem:[%s2529_s18 + $0x18] sm:$0xff]  ;;  %1525 = vmatpush.msrb.mxu0 %v532_v28  ;;  %1722 = vmatpush.msrb.mxu3 %v716_v36 }
 0x14b   : > { %v924_v23 = vpop.f32.mrf.mxu2  ;;  %1053 = vmatmul.f32.gmra.mxu0 %v2740_v32  ;;  %1587 = vmatpush.msrb.mxu1 %v608_v44  ;;  %v592_v44 = vld [vmem:[#allocation5 + $0x358] sm:$0xff] }
 0x14c   : > { %1118 = vmatmul.f32.gmra.mxu1 %v2743_v33  ;;  %v989_v12 = vpop.f32.mrf.mxu3  ;;  %v925_v5 = vadd.f32 %v924_v23, %v860_v10  ;;  %v672_v33 = vld [vmem:[#allocation5 + $0x5d8] sm:$0xff]  ;;  %v2909_v23 = vld [vmem:[%s2529_s18] sm:$0xff]  ;;  %1526 = vmatpush.msrb.mxu0 %v528_v25 }
 0x14d   : > { %1652 = vmatpush.msrb.mxu2 %v672_v33  ;;  %1588 = vmatpush.msrb.mxu1 %v604_v59  ;;  %v660_v10 = vld [vmem:[#allocation5 + $0x578] sm:$0xff] }
 0x14e   : > { %v990_v48 = vadd.f32 %v989_v12, %v925_v5  ;;  %v656_v33 = vld [vmem:[#allocation5 + $0x558] sm:$0xff]  ;;  %1527 = vmatpush.msrb.mxu0 %v524_v39 }
 0x14f   : > { %1653 = vmatpush.msrb.mxu2 %v668_v57  ;;  %1589 = vmatpush.msrb.mxu1 %v600_v6  ;;  %v652_v57 = vld [vmem:[#allocation5 + $0x538] sm:$0xff] }
 0x150   : > { %v1829_v29 = vadd.f32 %v990_v48, %v2802_v18  ;;  %1186 = vmatmul.f32.gmra.mxu2 %v3410_v60  ;;  %v797_v16 = vpop.f32.mrf.mxu0  ;;  %v596_v48 = vld [vmem:[#allocation5 + $0x378] sm:$0xff] }
 0x151   : > { %v862_v17 = vpop.f32.mrf.mxu1  ;;  %1251 = vmatmul.f32.gmra.mxu3 %v3411_v49  ;;  %1654 = vmatpush.msrb.mxu2 %v664_v2  ;;  %v588_v59 = vld [vmem:[#allocation5 + $0x338] sm:$0xff] }
 0x152   : > { %v863_v32 = vadd.f32 %v862_v17, %v797_v16  ;;  %1893 = vst [vmem:[%s2809_s20 + $0x180] sm:$0xff] %v1829_v29  ;;  %1590 = vmatpush.msrb.mxu1 %v596_v48  ;;  %v2921_v16 = vld [vmem:[%s2529_s18 + $0x30] sm:$0xff]  ;;  %v648_v2 = vld [vmem:[#allocation5 + $0x518] sm:$0xff]  ;;  %v2984_v48 = vld [vmem:[%s2529_s18 + $0x80] sm:$0xff] }
 0x153   : > { %v927_v61 = vpop.f32.mrf.mxu2  ;;  %1056 = vmatmul.f32.gmra.mxu0 %v3412_v50  ;;  %1655 = vmatpush.msrb.mxu2 %v660_v10  ;;  %v2930_v50 = vld [vmem:[%s2529_s18 + $0x20] sm:$0xff]  ;;  %v712_v19 = vld [vmem:[#allocation5 + $0x718] sm:$0xff] }
 0x154   : > { %1121 = vmatmul.f32.gmra.mxu1 %v3413_v51  ;;  %v992_v24 = vpop.f32.mrf.mxu3  ;;  %v928_v31 = vadd.f32 %v927_v61, %v863_v32  ;;  %v2934_v51 = vld [vmem:[%s2529_s18 + $0x28] sm:$0xff]  ;;  %1723 = vmatpush.msrb.mxu3 %v712_v19  ;;  %v520_v6 = vld [vmem:[#allocation5 + $0x118] sm:$0xff] }
 0x155   : > { %1656 = vmatpush.msrb.mxu2 %v656_v33  ;;  %1591 = vmatpush.msrb.mxu1 %v592_v44  ;;  %v2979_v11 = vld [vmem:[%s2529_s18 + $0x98] sm:$0xff] }
 0x156   : > { %v993_v45 = vadd.f32 %v992_v24, %v928_v31  ;;  %1528 = vmatpush.msrb.mxu0 %v520_v6  ;;  %v2997_v25 = vld [vmem:[%s2529_s18 + $0xb8] sm:$0xff] }
 0x157   : > { %1657 = vmatpush.msrb.mxu2 %v652_v57  ;;  %1592 = vmatpush.msrb.mxu1 %v588_v59  ;;  %v3011_v59 = vld [vmem:[%s2529_s18 + $0xd0] sm:$0xff] }
 0x158   : > { %v1833_v26 = vadd.f32 %v993_v45, %v2802_v18  ;;  %1189 = vmatmul.f32.gmra.mxu2 %v3414_v27  ;;  %v800_v34 = vpop.f32.mrf.mxu0  ;;  %v2939_v27 = vld [vmem:[%s2529_s18 + $0x50] sm:$0xff] }
 0x159   : > { %v865_v35 = vpop.f32.mrf.mxu1  ;;  %1254 = vmatmul.f32.gmra.mxu3 %v3415_v56  ;;  %v2943_v56 = vld [vmem:[%s2529_s18 + $0x58] sm:$0xff]  ;;  %1658 = vmatpush.msrb.mxu2 %v648_v2 }
 0x15a   : > { %v866_v14 = vadd.f32 %v865_v35, %v800_v34  ;;  %1897 = vst [vmem:[%s2809_s20 + $0x1a0] sm:$0xff] %v1833_v26  ;;  %v700_v2 = vld [vmem:[#allocation5 + $0x6b8] sm:$0xff] }
 0x15b   : > { %v930_v46 = vpop.f32.mrf.mxu2  ;;  %1059 = vmatmul.f32.gmra.mxu0 %v3416_v37  ;;  %v2948_v37 = vld [vmem:[%s2529_s18 + $0x40] sm:$0xff] }
 0x15c   : > { %1124 = vmatmul.f32.gmra.mxu1 %v3417_v15  ;;  %v995_v58 = vpop.f32.mrf.mxu3  ;;  %v931_v38 = vadd.f32 %v930_v46, %v866_v14  ;;  %v2952_v15 = vld [vmem:[%s2529_s18 + $0x48] sm:$0xff] }
 0x15e   : > { %v996_v47 = vadd.f32 %v995_v58, %v931_v38 }
 0x160   : > { %v1837_v62 = vadd.f32 %v996_v47, %v2802_v18  ;;  %1192 = vmatmul.f32.gmra.mxu2 %v3418_v40  ;;  %v803_v63 = vpop.f32.mrf.mxu0  ;;  %v2957_v40 = vld [vmem:[%s2529_s18 + $0x70] sm:$0xff] }
 0x161   : > { %v868_v52 = vpop.f32.mrf.mxu1  ;;  %1257 = vmatmul.f32.gmra.mxu3 %v3419_v41  ;;  %v2961_v41 = vld [vmem:[%s2529_s18 + $0x78] sm:$0xff] }
 0x162   : > { %v869_v53 = vadd.f32 %v868_v52, %v803_v63  ;;  %1901 = vst [vmem:[%s2809_s20 + $0x1c0] sm:$0xff] %v1837_v62 }
 0x163   : > { %v933_v54 = vpop.f32.mrf.mxu2  ;;  %1062 = vmatmul.f32.gmra.mxu0 %v3420_v55  ;;  %v2966_v55 = vld [vmem:[%s2529_s18 + $0x60] sm:$0xff] }
 0x164   : > { %1127 = vmatmul.f32.gmra.mxu1 %v2791_v0  ;;  %v998_v3 = vpop.f32.mrf.mxu3  ;;  %v934_v20 = vadd.f32 %v933_v54, %v869_v53 }
 0x166   : > { %v999_v7 = vadd.f32 %v998_v3, %v934_v20  ;;  %v2970_v3 = vld [vmem:[%s2529_s18 + $0x68] sm:$0xff] }
 0x168   : > { %v1841_v8 = vadd.f32 %v999_v7, %v2802_v18  ;;  %1407 = vmatmul.f32.vlgmr.msra.gmra.mxu2 %v2900_v43  ;;  %v1018_v9 = vpop.f32.mrf.mxu0  ;;  %v2913_v18 = vld [vmem:[%s2529_s18 + $0x8] sm:$0xff]  ;;  %v584_v7 = vld [vmem:[#allocation5 + $0x318] sm:$0xff] }
 0x169   : > { %v1083_v0 = vpop.f32.mrf.mxu1  ;;  %1472 = vmatmul.f32.vlgmr.msra.gmra.mxu3 %v2904_v21  ;;  %1593 = vmatpush.msrb.mxu1 %v584_v7  ;;  %v508_v7 = vld [vmem:[#allocation5 + $0xb8] sm:$0xff] }
 0x16a   : > { %v1084_v22 = vadd.f32 %v1083_v0, %v1018_v9  ;;  %1905 = vst [vmem:[%s2809_s20 + $0x1e0] sm:$0xff] %v1841_v8  ;;  %v2975_v0 = vld [vmem:[%s2529_s18 + $0x90] sm:$0xff] }
 0x16b   : > { %v1148_v4 = vpop.f32.mrf.mxu2  ;;  %1277 = vmatmul.f32.vlgmr.msra.gmra.mxu0 %v2909_v23 }
 0x16c   : > { %1342 = vmatmul.f32.vlgmr.msra.gmra.mxu1 %v2913_v18  ;;  %v1213_v12 = vpop.f32.mrf.mxu3  ;;  %v1149_v5 = vadd.f32 %v1148_v4, %v1084_v22 }
 0x16e   : > { %v1214_v29 = vadd.f32 %v1213_v12, %v1149_v5  ;;  %v644_v12 = vld [vmem:[#allocation5 + $0x4f8] sm:$0xff] }
 0x16f   : > { %v708_v5 = vld [vmem:[#allocation5 + $0x6f8] sm:$0xff]  ;;  %1659 = vmatpush.msrb.mxu2 %v644_v12 }
 0x170   : > { %v1782_v60 = vadd.f32 %v1214_v29, %v2917_v13  ;;  %1410 = vmatmul.f32.gmra.mxu2 %v2921_v16  ;;  %v1021_v17 = vpop.f32.mrf.mxu0  ;;  %v2988_v29 = vld [vmem:[%s2529_s18 + $0x88] sm:$0xff]  ;;  %1724 = vmatpush.msrb.mxu3 %v708_v5  ;;  %v3033_v5 = vld [vmem:[%s2529_s18 + $0xf8] sm:$0xff] }
 0x171   : > { %v1086_v49 = vpop.f32.mrf.mxu1  ;;  %1475 = vmatmul.f32.gmra.mxu3 %v2925_v1 }
 0x172   : > { %v1087_v32 = vadd.f32 %v1086_v49, %v1021_v17  ;;  %1846 = vst [vmem:[%s2809_s20 + $0x8] sm:$0xff] %v1782_v60  ;;  %v516_v49 = vld [vmem:[#allocation5 + $0xf8] sm:$0xff] }
 0x173   : > { %v1151_v61 = vpop.f32.mrf.mxu2  ;;  %1280 = vmatmul.f32.gmra.mxu0 %v2930_v50 }
 0x174   : > { %1345 = vmatmul.f32.gmra.mxu1 %v2934_v51  ;;  %v1216_v24 = vpop.f32.mrf.mxu3  ;;  %v1152_v31 = vadd.f32 %v1151_v61, %v1087_v32  ;;  %v580_v32 = vld [vmem:[#allocation5 + $0x2f8] sm:$0xff]  ;;  %1529 = vmatpush.msrb.mxu0 %v516_v49  ;;  %v2993_v61 = vld [vmem:[%s2529_s18 + $0xb0] sm:$0xff] }
 0x175   : > { %1594 = vmatpush.msrb.mxu1 %v580_v32  ;;  %v3038_v32 = vld [vmem:[%s2529_s18 + $0xe0] sm:$0xff] }
 0x176   : > { %v1217_v45 = vadd.f32 %v1216_v24, %v1152_v31 }
 0x178   : > { %v1786_v26 = vadd.f32 %v1217_v45, %v2917_v13  ;;  %1413 = vmatmul.f32.gmra.mxu2 %v2939_v27  ;;  %v1024_v34 = vpop.f32.mrf.mxu0  ;;  %v640_v45 = vld [vmem:[#allocation5 + $0x4d8] sm:$0xff] }
 0x179   : > { %v1089_v35 = vpop.f32.mrf.mxu1  ;;  %1478 = vmatmul.f32.gmra.mxu3 %v2943_v56  ;;  %1660 = vmatpush.msrb.mxu2 %v640_v45 }
 0x17a   : > { %v1090_v14 = vadd.f32 %v1089_v35, %v1024_v34  ;;  %1850 = vst [vmem:[%s2809_s20 + $0x28] sm:$0xff] %v1786_v26  ;;  %v704_v26 = vld [vmem:[#allocation5 + $0x6d8] sm:$0xff]  ;;  %v3002_v35 = vld [vmem:[%s2529_s18 + $0xa0] sm:$0xff] }
 0x17b   : > { %v1154_v46 = vpop.f32.mrf.mxu2  ;;  %1283 = vmatmul.f32.gmra.mxu0 %v2948_v37  ;;  %1725 = vmatpush.msrb.mxu3 %v704_v26 }
 0x17c   : > { %1348 = vmatmul.f32.gmra.mxu1 %v2952_v15  ;;  %v1219_v58 = vpop.f32.mrf.mxu3  ;;  %v1155_v38 = vadd.f32 %v1154_v46, %v1090_v14  ;;  %v3006_v14 = vld [vmem:[%s2529_s18 + $0xa8] sm:$0xff]  ;;  %v512_v46 = vld [vmem:[#allocation5 + $0xd8] sm:$0xff] }
 0x17d   : > { %1530 = vmatpush.msrb.mxu0 %v512_v46  ;;  %1726 = vmatpush.msrb.mxu3 %v700_v2  ;;  %v3051_v46 = vld [vmem:[%s2529_s18 + $0x118] sm:$0xff] }
 0x17e   : > { %v1220_v47 = vadd.f32 %v1219_v58, %v1155_v38  ;;  %v576_v58 = vld [vmem:[#allocation5 + $0x2d8] sm:$0xff] }
 0x17f   : > { %1595 = vmatpush.msrb.mxu1 %v576_v58  ;;  %1531 = vmatpush.msrb.mxu0 %v508_v7 }
 0x180   : > { %v1790_v62 = vadd.f32 %v1220_v47, %v2917_v13  ;;  %1416 = vmatmul.f32.gmra.mxu2 %v2957_v40  ;;  %v1027_v63 = vpop.f32.mrf.mxu0 }
 0x181   : > { %v1092_v52 = vpop.f32.mrf.mxu1  ;;  %1481 = vmatmul.f32.gmra.mxu3 %v2961_v41 }
 0x182   : > { %v1093_v53 = vadd.f32 %v1092_v52, %v1027_v63  ;;  %1854 = vst [vmem:[%s2809_s20 + $0x48] sm:$0xff] %v1790_v62  ;;  %v3015_v63 = vld [vmem:[%s2529_s18 + $0xd8] sm:$0xff] }
 0x183   : > { %v1157_v54 = vpop.f32.mrf.mxu2  ;;  %1286 = vmatmul.f32.gmra.mxu0 %v2966_v55 }
 0x184   : > { %1351 = vmatmul.f32.gmra.mxu1 %v2970_v3  ;;  %v1222_v20 = vpop.f32.mrf.mxu3  ;;  %v1158_v42 = vadd.f32 %v1157_v54, %v1093_v53  ;;  %v636_v53 = vld [vmem:[#allocation5 + $0x4b8] sm:$0xff]  ;;  %v3020_v54 = vld [vmem:[%s2529_s18 + $0xc0] sm:$0xff] }
 0x185   : > { %1661 = vmatpush.msrb.mxu2 %v636_v53 }
 0x186   : > { %v1223_v8 = vadd.f32 %v1222_v20, %v1158_v42  ;;  %v3024_v20 = vld [vmem:[%s2529_s18 + $0xc8] sm:$0xff] }
 0x188   : > { %v1794_v9 = vadd.f32 %v1223_v8, %v2917_v13  ;;  %1419 = vmatmul.f32.gmra.mxu2 %v2975_v0  ;;  %v1030_v22 = vpop.f32.mrf.mxu0  ;;  %v572_v8 = vld [vmem:[#allocation5 + $0x2b8] sm:$0xff] }
 0x189   : > { %v1095_v10 = vpop.f32.mrf.mxu1  ;;  %1484 = vmatmul.f32.gmra.mxu3 %v2979_v11  ;;  %1596 = vmatpush.msrb.mxu1 %v572_v8  ;;  %v3065_v8 = vld [vmem:[%s2529_s18 + $0x130] sm:$0xff] }
 0x18a   : > { %v1096_v4 = vadd.f32 %v1095_v10, %v1030_v22  ;;  %1858 = vst [vmem:[%s2809_s20 + $0x68] sm:$0xff] %v1794_v9  ;;  %v3029_v10 = vld [vmem:[%s2529_s18 + $0xf0] sm:$0xff] }
 0x18b   : > { %v1160_v28 = vpop.f32.mrf.mxu2  ;;  %1289 = vmatmul.f32.gmra.mxu0 %v2984_v48 }
 0x18c   : > { %1354 = vmatmul.f32.gmra.mxu1 %v2988_v29  ;;  %v1225_v60 = vpop.f32.mrf.mxu3  ;;  %v1161_v17 = vadd.f32 %v1160_v28, %v1096_v4 }
 0x18e   : > { %v1226_v33 = vadd.f32 %v1225_v60, %v1161_v17  ;;  %v632_v60 = vld [vmem:[#allocation5 + $0x498] sm:$0xff] }
 0x18f   : > { %v696_v17 = vld [vmem:[#allocation5 + $0x698] sm:$0xff]  ;;  %1662 = vmatpush.msrb.mxu2 %v632_v60 }
 0x190   : > { %v1798_v30 = vadd.f32 %v1226_v33, %v2917_v13  ;;  %1422 = vmatmul.f32.gmra.mxu2 %v2993_v61  ;;  %v1033_v24 = vpop.f32.mrf.mxu0  ;;  %v3042_v33 = vld [vmem:[%s2529_s18 + $0xe8] sm:$0xff]  ;;  %1727 = vmatpush.msrb.mxu3 %v696_v17  ;;  %v688_v60 = vld [vmem:[#allocation5 + $0x658] sm:$0xff] }
 0x191   : > { %v1098_v31 = vpop.f32.mrf.mxu1  ;;  %1487 = vmatmul.f32.gmra.mxu3 %v2997_v25 }
 0x192   : > { %v1099_v44 = vadd.f32 %v1098_v31, %v1033_v24  ;;  %1862 = vst [vmem:[%s2809_s20 + $0x88] sm:$0xff] %v1798_v30  ;;  %v504_v31 = vld [vmem:[#allocation5 + $0x98] sm:$0xff] }
 0x193   : > { %v1163_v34 = vpop.f32.mrf.mxu2  ;;  %1292 = vmatmul.f32.gmra.mxu0 %v3002_v35 }
 0x194   : > { %1357 = vmatmul.f32.gmra.mxu1 %v3006_v14  ;;  %v1228_v57 = vpop.f32.mrf.mxu3  ;;  %v1164_v36 = vadd.f32 %v1163_v34, %v1099_v44  ;;  %v568_v44 = vld [vmem:[#allocation5 + $0x298] sm:$0xff]  ;;  %1532 = vmatpush.msrb.mxu0 %v504_v31  ;;  %v3047_v34 = vld [vmem:[%s2529_s18 + $0x110] sm:$0xff] }
 0x195   : > { %1597 = vmatpush.msrb.mxu1 %v568_v44  ;;  %v496_v44 = vld [vmem:[#allocation5 + $0x58] sm:$0xff] }
 0x196   : > { %v1229_v38 = vadd.f32 %v1228_v57, %v1164_v36 }
 0x198   : > { %v1802_v39 = vadd.f32 %v1229_v38, %v2917_v13  ;;  %1425 = vmatmul.f32.gmra.mxu2 %v3011_v59  ;;  %v1036_v47 = vpop.f32.mrf.mxu0  ;;  %v628_v38 = vld [vmem:[#allocation5 + $0x478] sm:$0xff] }
 0x199   : > { %v1101_v62 = vpop.f32.mrf.mxu1  ;;  %1490 = vmatmul.f32.gmra.mxu3 %v3015_v63  ;;  %1663 = vmatpush.msrb.mxu2 %v628_v38 }
 0x19a   : > { %v1102_v52 = vadd.f32 %v1101_v62, %v1036_v47  ;;  %1866 = vst [vmem:[%s2809_s20 + $0xa8] sm:$0xff] %v1802_v39  ;;  %v692_v39 = vld [vmem:[#allocation5 + $0x678] sm:$0xff]  ;;  %v3056_v62 = vld [vmem:[%s2529_s18 + $0x100] sm:$0xff] }
 0x19b   : > { %v1166_v19 = vpop.f32.mrf.mxu2  ;;  %1295 = vmatmul.f32.gmra.mxu0 %v3020_v54  ;;  %1728 = vmatpush.msrb.mxu3 %v692_v39  ;;  %v3087_v39 = vld [vmem:[%s2529_s18 + $0x158] sm:$0xff] }
 0x19c   : > { %1360 = vmatmul.f32.gmra.mxu1 %v3024_v20  ;;  %v1231_v42 = vpop.f32.mrf.mxu3  ;;  %v1167_v6 = vadd.f32 %v1166_v19, %v1102_v52  ;;  %v3060_v52 = vld [vmem:[%s2529_s18 + $0x108] sm:$0xff]  ;;  %v500_v19 = vld [vmem:[#allocation5 + $0x78] sm:$0xff] }
 0x19d   : > { %1533 = vmatpush.msrb.mxu0 %v500_v19  ;;  %1729 = vmatpush.msrb.mxu3 %v688_v60 }
 0x19e   : > { %v1232_v9 = vadd.f32 %v1231_v42, %v1167_v6  ;;  %v564_v42 = vld [vmem:[#allocation5 + $0x278] sm:$0xff] }
 0x19f   : > { %1598 = vmatpush.msrb.mxu1 %v564_v42  ;;  %1534 = vmatpush.msrb.mxu0 %v496_v44  ;;  %v3092_v42 = vld [vmem:[%s2529_s18 + $0x140] sm:$0xff]  ;;  %v3105_v44 = vld [vmem:[%s2529_s18 + $0x178] sm:$0xff] }
 0x1a0   : > { %v1806_v22 = vadd.f32 %v1232_v9, %v2917_v13  ;;  %1428 = vmatmul.f32.gmra.mxu2 %v3029_v10  ;;  %v1039_v4 = vpop.f32.mrf.mxu0 }
 0x1a1   : > { %v1104_v12 = vpop.f32.mrf.mxu1  ;;  %1493 = vmatmul.f32.gmra.mxu3 %v3033_v5 }
 0x1a2   : > { %v1105_v28 = vadd.f32 %v1104_v12, %v1039_v4  ;;  %1870 = vst [vmem:[%s2809_s20 + $0xc8] sm:$0xff] %v1806_v22  ;;  %v3069_v4 = vld [vmem:[%s2529_s18 + $0x138] sm:$0xff] }
 0x1a3   : > { %v1169_v49 = vpop.f32.mrf.mxu2  ;;  %1298 = vmatmul.f32.gmra.mxu0 %v3038_v32 }
 0x1a4   : > { %1363 = vmatmul.f32.gmra.mxu1 %v3042_v33  ;;  %v1234_v30 = vpop.f32.mrf.mxu3  ;;  %v1170_v24 = vadd.f32 %v1169_v49, %v1105_v28  ;;  %v624_v28 = vld [vmem:[#allocation5 + $0x458] sm:$0xff]  ;;  %v3074_v49 = vld [vmem:[%s2529_s18 + $0x120] sm:$0xff] }
 0x1a5   : > { %1664 = vmatpush.msrb.mxu2 %v624_v28 }
 0x1a6   : > { %v1235_v45 = vadd.f32 %v1234_v30, %v1170_v24  ;;  %v3078_v30 = vld [vmem:[%s2529_s18 + $0x128] sm:$0xff] }
 0x1a8   : > { %v1810_v26 = vadd.f32 %v1235_v45, %v2917_v13  ;;  %1431 = vmatmul.f32.gmra.mxu2 %v3047_v34  ;;  %v1042_v57 = vpop.f32.mrf.mxu0  ;;  %v560_v45 = vld [vmem:[#allocation5 + $0x258] sm:$0xff] }
 0x1a9   : > { %v1107_v36 = vpop.f32.mrf.mxu1  ;;  %1496 = vmatmul.f32.gmra.mxu3 %v3051_v46  ;;  %1599 = vmatpush.msrb.mxu1 %v560_v45 }
 0x1aa   : > { %v1108_v58 = vadd.f32 %v1107_v36, %v1042_v57  ;;  %1874 = vst [vmem:[%s2809_s20 + $0xe8] sm:$0xff] %v1810_v26  ;;  %v3083_v36 = vld [vmem:[%s2529_s18 + $0x150] sm:$0xff] }
 0x1ab   : > { %v1172_v47 = vpop.f32.mrf.mxu2  ;;  %1301 = vmatmul.f32.gmra.mxu0 %v3056_v62 }
 0x1ac   : > { %1366 = vmatmul.f32.gmra.mxu1 %v3060_v52  ;;  %v1237_v53 = vpop.f32.mrf.mxu3  ;;  %v1173_v2 = vadd.f32 %v1172_v47, %v1108_v58 }
 0x1ae   : > { %v1238_v6 = vadd.f32 %v1237_v53, %v1173_v2  ;;  %v620_v53 = vld [vmem:[#allocation5 + $0x438] sm:$0xff] }
 0x1af   : > { %v684_v2 = vld [vmem:[#allocation5 + $0x638] sm:$0xff]  ;;  %1665 = vmatpush.msrb.mxu2 %v620_v53 }
 0x1b0   : > { %v1814_v7 = vadd.f32 %v1238_v6, %v2917_v13  ;;  %1434 = vmatmul.f32.gmra.mxu2 %v3065_v8  ;;  %v1045_v9 = vpop.f32.mrf.mxu0  ;;  %v3096_v6 = vld [vmem:[%s2529_s18 + $0x148] sm:$0xff]  ;;  %1730 = vmatpush.msrb.mxu3 %v684_v2 }
 0x1b1   : > { %v1110_v22 = vpop.f32.mrf.mxu1  ;;  %1499 = vmatmul.f32.gmra.mxu3 %v3069_v4 }
 0x1b2   : > { %v1111_v12 = vadd.f32 %v1110_v22, %v1045_v9  ;;  %1878 = vst [vmem:[%s2809_s20 + $0x108] sm:$0xff] %v1814_v7  ;;  %v492_v22 = vld [vmem:[#allocation5 + $0x38] sm:$0xff] }
 0x1b3   : > { %v1175_v17 = vpop.f32.mrf.mxu2  ;;  %1304 = vmatmul.f32.gmra.mxu0 %v3074_v49 }
 0x1b4   : > { %1369 = vmatmul.f32.gmra.mxu1 %v3078_v30  ;;  %v1240_v24 = vpop.f32.mrf.mxu3  ;;  %v1176_v31 = vadd.f32 %v1175_v17, %v1111_v12  ;;  %v556_v12 = vld [vmem:[#allocation5 + $0x238] sm:$0xff]  ;;  %1535 = vmatpush.msrb.mxu0 %v492_v22  ;;  %v3101_v17 = vld [vmem:[%s2529_s18 + $0x170] sm:$0xff] }
 0x1b5   : > { %1600 = vmatpush.msrb.mxu1 %v556_v12  ;;  %v3119_v12 = vld [vmem:[%s2529_s18 + $0x190] sm:$0xff] }
 0x1b6   : > { %v1241_v26 = vadd.f32 %v1240_v24, %v1176_v31 }
 0x1b8   : > { %v1818_v57 = vadd.f32 %v1241_v26, %v2917_v13  ;;  %1437 = vmatmul.f32.gmra.mxu2 %v3083_v36  ;;  %v1048_v58 = vpop.f32.mrf.mxu0  ;;  %v616_v26 = vld [vmem:[#allocation5 + $0x418] sm:$0xff] }
 0x1b9   : > { %v1113_v38 = vpop.f32.mrf.mxu1  ;;  %1502 = vmatmul.f32.gmra.mxu3 %v3087_v39  ;;  %1666 = vmatpush.msrb.mxu2 %v616_v26  ;;  %v3128_v26 = vld [vmem:[%s2529_s18 + $0x180] sm:$0xff] }
 0x1ba   : > { %v1114_v47 = vadd.f32 %v1113_v38, %v1048_v58  ;;  %1882 = vst [vmem:[%s2809_s20 + $0x128] sm:$0xff] %v1818_v57  ;;  %v680_v57 = vld [vmem:[#allocation5 + $0x618] sm:$0xff]  ;;  %v3110_v38 = vld [vmem:[%s2529_s18 + $0x160] sm:$0xff] }
 0x1bb   : > { %v1178_v19 = vpop.f32.mrf.mxu2  ;;  %1307 = vmatmul.f32.gmra.mxu0 %v3092_v42  ;;  %1731 = vmatpush.msrb.mxu3 %v680_v57  ;;  %3421 = vst [vmem:[#allocation12_spill] sm:$0xff] %v3128_v26  ;;  %v3132_v57 = vld [vmem:[%s2529_s18 + $0x188] sm:$0xff] }
 0x1bc   : > { %1372 = vmatmul.f32.gmra.mxu1 %v3096_v6  ;;  %v1243_v7 = vpop.f32.mrf.mxu3  ;;  %v1179_v9 = vadd.f32 %v1178_v19, %v1114_v47  ;;  %v3114_v47 = vld [vmem:[%s2529_s18 + $0x168] sm:$0xff]  ;;  %v488_v19 = vld [vmem:[#allocation5 + $0x18] sm:$0xff]  ;;  %3422 = vst [vmem:[#allocation13_spill] sm:$0xff] %v3132_v57 }
 0x1bd   : > { %1536 = vmatpush.msrb.mxu0 %v488_v19 }
 0x1be   : > { %v1244_v28 = vadd.f32 %v1243_v7, %v1179_v9  ;;  %v552_v7 = vld [vmem:[#allocation5 + $0x218] sm:$0xff] }
 0x1bf   : > { %1601 = vmatpush.msrb.mxu1 %v552_v7  ;;  %v3137_v7 = vld [vmem:[%s2529_s18 + $0x1b0] sm:$0xff] }
 0x1c0   : > { %v1822_v60 = vadd.f32 %v1244_v28, %v2917_v13  ;;  %1440 = vmatmul.f32.gmra.mxu2 %v3101_v17  ;;  %v1051_v24 = vpop.f32.mrf.mxu0  ;;  %3423 = vst [vmem:[#allocation14_spill] sm:$0xff] %v3137_v7 }
 0x1c1   : > { %v1116_v31 = vpop.f32.mrf.mxu1  ;;  %1505 = vmatmul.f32.gmra.mxu3 %v3105_v44 }
 0x1c2   : > { %v1117_v45 = vadd.f32 %v1116_v31, %v1051_v24  ;;  %1886 = vst [vmem:[%s2809_s20 + $0x148] sm:$0xff] %v1822_v60  ;;  %v3123_v24 = vld [vmem:[%s2529_s18 + $0x198] sm:$0xff] }
 0x1c3   : > { %v1181_v58 = vpop.f32.mrf.mxu2  ;;  %1310 = vmatmul.f32.gmra.mxu0 %v3110_v38 }
 0x1c4   : > { %1375 = vmatmul.f32.gmra.mxu1 %v3114_v47  ;;  %v1246_v53 = vpop.f32.mrf.mxu3  ;;  %v1182_v2 = vadd.f32 %v1181_v58, %v1117_v45 }
 0x1c6   : > { %v1247_v9 = vadd.f32 %v1246_v53, %v1182_v2 }
 0x1c8   : > { %v1826_v22 = vadd.f32 %v1247_v9, %v2917_v13  ;;  %1443 = vmatmul.f32.gmra.mxu2 %v3119_v12  ;;  %v1054_v28 = vpop.f32.mrf.mxu0 }
 0x1c9   : > { %v1119_v60 = vpop.f32.mrf.mxu1  ;;  %1508 = vmatmul.f32.gmra.mxu3 %v3123_v24 }
 0x1ca   : > { %v1120_v31 = vadd.f32 %v1119_v60, %v1054_v28  ;;  %1890 = vst [vmem:[%s2809_s20 + $0x168] sm:$0xff] %v1826_v22  ;;  %v3141_v28 = vld [vmem:[%s2529_s18 + $0x1b8] sm:$0xff] }
 0x1cb   : > { %v1184_v45 = vpop.f32.mrf.mxu2  ;;  %1313 = vmatmul.f32.gmra.mxu0 %v3128_v26  ;;  %3424 = vst [vmem:[#allocation15_spill] sm:$0xff] %v3141_v28  ;;  %v3182_v26 = vld [vmem:[%s2529_s18 + $0x1e0] sm:$0xff] }
 0x1cc   : > { %1378 = vmatmul.f32.gmra.mxu1 %v3132_v57  ;;  %v1249_v58 = vpop.f32.mrf.mxu3  ;;  %v1185_v53 = vadd.f32 %v1184_v45, %v1120_v31  ;;  %v3146_v31 = vld [vmem:[%s2529_s18 + $0x1a0] sm:$0xff]  ;;  %v3150_v45 = vld [vmem:[%s2529_s18 + $0x1a8] sm:$0xff]  ;;  %3432 = vst [vmem:[#allocation23_spill] sm:$0xff] %v3182_v26 }
 0x1cd   : > { %3425 = vst [vmem:[#allocation16_spill] sm:$0xff] %v3146_v31 }
 0x1ce   : > { %v1250_v2 = vadd.f32 %v1249_v58, %v1185_v53  ;;  %3426 = vst [vmem:[#allocation17_spill] sm:$0xff] %v3150_v45 }
 0x1d0   : > { %v1830_v19 = vadd.f32 %v1250_v2, %v2917_v13  ;;  %1446 = vmatmul.f32.gmra.mxu2 %v3137_v7  ;;  %v1057_v9 = vpop.f32.mrf.mxu0  ;;  %v3155_v7 = vld [vmem:[%s2529_s18 + $0x1d0] sm:$0xff] }
 0x1d1   : > { %v1122_v22 = vpop.f32.mrf.mxu1  ;;  %1511 = vmatmul.f32.gmra.mxu3 %v3141_v28  ;;  %3427 = vst [vmem:[#allocation18_spill] sm:$0xff] %v3155_v7 }
 0x1d2   : > { %v1123_v60 = vadd.f32 %v1122_v22, %v1057_v9  ;;  %1894 = vst [vmem:[%s2809_s20 + $0x188] sm:$0xff] %v1830_v19  ;;  %v3159_v22 = vld [vmem:[%s2529_s18 + $0x1d8] sm:$0xff] }
 0x1d3   : > { %v1187_v57 = vpop.f32.mrf.mxu2  ;;  %1316 = vmatmul.f32.gmra.mxu0 %v3146_v31  ;;  %3428 = vst [vmem:[#allocation19_spill] sm:$0xff] %v3159_v22 }
 0x1d4   : > { %1381 = vmatmul.f32.gmra.mxu1 %v3150_v45  ;;  %v1252_v58 = vpop.f32.mrf.mxu3  ;;  %v1188_v53 = vadd.f32 %v1187_v57, %v1123_v60  ;;  %v3164_v57 = vld [vmem:[%s2529_s18 + $0x1c0] sm:$0xff]  ;;  %v3168_v60 = vld [vmem:[%s2529_s18 + $0x1c8] sm:$0xff] }
 0x1d5   : > { %3429 = vst [vmem:[#allocation20_spill] sm:$0xff] %v3164_v57 }
 0x1d6   : > { %v1253_v2 = vadd.f32 %v1252_v58, %v1188_v53  ;;  %3430 = vst [vmem:[#allocation21_spill] sm:$0xff] %v3168_v60 }
 0x1d8   : > { %v1834_v28 = vadd.f32 %v1253_v2, %v2917_v13  ;;  %1449 = vmatmul.f32.gmra.mxu2 %v3155_v7  ;;  %v1060_v19 = vpop.f32.mrf.mxu0  ;;  %v3173_v7 = vld [vmem:[%s2529_s18 + $0x1f0] sm:$0xff] }
 0x1d9   : > { %v1125_v9 = vpop.f32.mrf.mxu1  ;;  %1514 = vmatmul.f32.gmra.mxu3 %v3159_v22 }
 0x1da   : > { %v1126_v31 = vadd.f32 %v1125_v9, %v1060_v19  ;;  %1898 = vst [vmem:[%s2809_s20 + $0x1a8] sm:$0xff] %v1834_v28  ;;  %v3177_v9 = vld [vmem:[%s2529_s18 + $0x1f8] sm:$0xff] }
 0x1db   : > { %v1190_v45 = vpop.f32.mrf.mxu2  ;;  %1319 = vmatmul.f32.gmra.mxu0 %v3164_v57  ;;  %3431 = vst [vmem:[#allocation22_spill] sm:$0xff] %v3177_v9 }
 0x1dc   : > { %1384 = vmatmul.f32.gmra.mxu1 %v3168_v60  ;;  %v1255_v58 = vpop.f32.mrf.mxu3  ;;  %v1191_v53 = vadd.f32 %v1190_v45, %v1126_v31  ;;  %v3186_v31 = vld [vmem:[%s2529_s18 + $0x1e8] sm:$0xff] }
 0x1dd   : > { %3433 = vst [vmem:[#allocation24_spill] sm:$0xff] %v3186_v31 }
 0x1de   : > { %v1256_v2 = vadd.f32 %v1255_v58, %v1191_v53 }
 0x1e0   : > { %v1838_v22 = vadd.f32 %v1256_v2, %v2917_v13  ;;  %1452 = vmatmul.f32.gmra.mxu2 %v3173_v7  ;;  %v1063_v28 = vpop.f32.mrf.mxu0 }
 0x1e1   : > { %v1128_v19 = vpop.f32.mrf.mxu1  ;;  %1517 = vmatmul.f32.gmra.mxu3 %v3177_v9 }
 0x1e2   : > { %v1129_v57 = vadd.f32 %v1128_v19, %v1063_v28  ;;  %1902 = vst [vmem:[%s2809_s20 + $0x1c8] sm:$0xff] %v1838_v22 }
 0x1e3   : > { %v1193_v60 = vpop.f32.mrf.mxu2  ;;  %1322 = vmatmul.f32.gmra.mxu0 %v3182_v26 }
 0x1e4   : > { %1387 = vmatmul.f32.gmra.mxu1 %v3186_v31  ;;  %v1258_v45 = vpop.f32.mrf.mxu3  ;;  %v1194_v58 = vadd.f32 %v1193_v60, %v1129_v57  ;;  %v3195_v57 = vld [vmem:[#allocation7] sm:$0xf] }
 0x1e6   : > { %v1259_v53 = vadd.f32 %v1258_v45, %v1194_v58 }
 0x1e8   : > { %v1842_v2 = vadd.f32 %v1259_v53, %v2917_v13  ;;  %1667 = vmatmul.f32.vlgmr.msrb.gmra.mxu2 %v2900_v43  ;;  %v1278_v9 = vpop.f32.mrf.mxu0  ;;  %v3198_v13 = vperm.slane %v3195_v57, 2 }
 0x1e9   : > { %v1343_v28 = vpop.f32.mrf.mxu1  ;;  %1732 = vmatmul.f32.vlgmr.msrb.gmra.mxu3 %v2904_v21 }
 0x1ea   : > { %v1344_v22 = vadd.f32 %v1343_v28, %v1278_v9  ;;  %1906 = vst [vmem:[%s2809_s20 + $0x1e8] sm:$0xff] %v1842_v2 }
 0x1eb   : > { %v1408_v19 = vpop.f32.mrf.mxu2  ;;  %1537 = vmatmul.f32.vlgmr.msrb.gmra.mxu0 %v2909_v23 }
 0x1ec   : > { %1602 = vmatmul.f32.vlgmr.msrb.gmra.mxu1 %v2913_v18  ;;  %v1473_v31 = vpop.f32.mrf.mxu3  ;;  %v1409_v26 = vadd.f32 %v1408_v19, %v1344_v22 }
 0x1ee   : > { %v1474_v43 = vadd.f32 %v1473_v31, %v1409_v26 }
 0x1f0   : > { %v1783_v60 = vadd.f32 %v1474_v43, %v3198_v13  ;;  %1670 = vmatmul.f32.gmra.mxu2 %v2921_v16  ;;  %v1281_v21 = vpop.f32.mrf.mxu0 }
 0x1f1   : > { %v1346_v9 = vpop.f32.mrf.mxu1  ;;  %1735 = vmatmul.f32.gmra.mxu3 %v2925_v1 }
 0x1f2   : > { %v1347_v23 = vadd.f32 %v1346_v9, %v1281_v21  ;;  %1847 = vst [vmem:[%s2809_s20 + $0x10] sm:$0xff] %v1783_v60 }
 0x1f3   : > { %v1411_v18 = vpop.f32.mrf.mxu2  ;;  %1540 = vmatmul.f32.gmra.mxu0 %v2930_v50 }
 0x1f4   : > { %1605 = vmatmul.f32.gmra.mxu1 %v2934_v51  ;;  %v1476_v45 = vpop.f32.mrf.mxu3  ;;  %v1412_v58 = vadd.f32 %v1411_v18, %v1347_v23 }
 0x1f6   : > { %v1477_v53 = vadd.f32 %v1476_v45, %v1412_v58 }
 0x1f8   : > { %v1787_v26 = vadd.f32 %v1477_v53, %v3198_v13  ;;  %1673 = vmatmul.f32.gmra.mxu2 %v2939_v27  ;;  %v1284_v16 = vpop.f32.mrf.mxu0 }
 0x1f9   : > { %v1349_v31 = vpop.f32.mrf.mxu1  ;;  %1738 = vmatmul.f32.gmra.mxu3 %v2943_v56 }
 0x1fa   : > { %v1350_v1 = vadd.f32 %v1349_v31, %v1284_v16  ;;  %1851 = vst [vmem:[%s2809_s20 + $0x30] sm:$0xff] %v1787_v26 }
 0x1fb   : > { %v1414_v2 = vpop.f32.mrf.mxu2  ;;  %1543 = vmatmul.f32.gmra.mxu0 %v2948_v37 }
 0x1fc   : > { %1608 = vmatmul.f32.gmra.mxu1 %v2952_v15  ;;  %v1479_v50 = vpop.f32.mrf.mxu3  ;;  %v1415_v51 = vadd.f32 %v1414_v2, %v1350_v1 }
 0x1fe   : > { %v1480_v28 = vadd.f32 %v1479_v50, %v1415_v51 }
 0x200   : > { %v1791_v22 = vadd.f32 %v1480_v28, %v3198_v13  ;;  %1676 = vmatmul.f32.gmra.mxu2 %v2957_v40  ;;  %v1287_v27 = vpop.f32.mrf.mxu0 }
 0x201   : > { %v1352_v19 = vpop.f32.mrf.mxu1  ;;  %1741 = vmatmul.f32.gmra.mxu3 %v2961_v41 }
 0x202   : > { %v1353_v56 = vadd.f32 %v1352_v19, %v1287_v27  ;;  %1855 = vst [vmem:[%s2809_s20 + $0x50] sm:$0xff] %v1791_v22 }
 0x203   : > { %v1417_v43 = vpop.f32.mrf.mxu2  ;;  %1546 = vmatmul.f32.gmra.mxu0 %v2966_v55 }
 0x204   : > { %1611 = vmatmul.f32.gmra.mxu1 %v2970_v3  ;;  %v1482_v37 = vpop.f32.mrf.mxu3  ;;  %v1418_v15 = vadd.f32 %v1417_v43, %v1353_v56 }
 0x206   : > { %v1483_v60 = vadd.f32 %v1482_v37, %v1418_v15 }
 0x208   : > { %v1795_v21 = vadd.f32 %v1483_v60, %v3198_v13  ;;  %1679 = vmatmul.f32.gmra.mxu2 %v2975_v0  ;;  %v1290_v40 = vpop.f32.mrf.mxu0 }
 0x209   : > { %v1355_v9 = vpop.f32.mrf.mxu1  ;;  %1744 = vmatmul.f32.gmra.mxu3 %v2979_v11 }
 0x20a   : > { %v1356_v41 = vadd.f32 %v1355_v9, %v1290_v40  ;;  %1859 = vst [vmem:[%s2809_s20 + $0x70] sm:$0xff] %v1795_v21 }
 0x20b   : > { %v1420_v23 = vpop.f32.mrf.mxu2  ;;  %1549 = vmatmul.f32.gmra.mxu0 %v2984_v48 }
 0x20c   : > { %1614 = vmatmul.f32.gmra.mxu1 %v2988_v29  ;;  %v1485_v55 = vpop.f32.mrf.mxu3  ;;  %v1421_v3 = vadd.f32 %v1420_v23, %v1356_v41 }
 0x20e   : > { %v1486_v18 = vadd.f32 %v1485_v55, %v1421_v3 }
 0x210   : > { %v1799_v45 = vadd.f32 %v1486_v18, %v3198_v13  ;;  %1682 = vmatmul.f32.gmra.mxu2 %v2993_v61  ;;  %v1293_v0 = vpop.f32.mrf.mxu0 }
 0x211   : > { %v1358_v58 = vpop.f32.mrf.mxu1  ;;  %1747 = vmatmul.f32.gmra.mxu3 %v2997_v25 }
 0x212   : > { %v1359_v11 = vadd.f32 %v1358_v58, %v1293_v0  ;;  %1863 = vst [vmem:[%s2809_s20 + $0x90] sm:$0xff] %v1799_v45 }
 0x213   : > { %v1423_v53 = vpop.f32.mrf.mxu2  ;;  %1552 = vmatmul.f32.gmra.mxu0 %v3002_v35 }
 0x214   : > { %1617 = vmatmul.f32.gmra.mxu1 %v3006_v14  ;;  %v1488_v48 = vpop.f32.mrf.mxu3  ;;  %v1424_v29 = vadd.f32 %v1423_v53, %v1359_v11  ;;  %v3434_v53 = vld [vmem:[#allocation12_spill] sm:$0xff] }
 0x216   : > { %v1489_v26 = vadd.f32 %v1488_v48, %v1424_v29 }
 0x218   : > { %v1803_v16 = vadd.f32 %v1489_v26, %v3198_v13  ;;  %1685 = vmatmul.f32.gmra.mxu2 %v3011_v59  ;;  %v1296_v61 = vpop.f32.mrf.mxu0 }
 0x219   : > { %v1361_v31 = vpop.f32.mrf.mxu1  ;;  %1750 = vmatmul.f32.gmra.mxu3 %v3015_v63 }
 0x21a   : > { %v1362_v25 = vadd.f32 %v1361_v31, %v1296_v61  ;;  %1867 = vst [vmem:[%s2809_s20 + $0xb0] sm:$0xff] %v1803_v16  ;;  %v3436_v16 = vld [vmem:[#allocation14_spill] sm:$0xff]  ;;  %v3437_v31 = vld [vmem:[#allocation15_spill] sm:$0xff] }
 0x21b   : > { %v1426_v1 = vpop.f32.mrf.mxu2  ;;  %1555 = vmatmul.f32.gmra.mxu0 %v3020_v54 }
 0x21c   : > { %1620 = vmatmul.f32.gmra.mxu1 %v3024_v20  ;;  %v1491_v35 = vpop.f32.mrf.mxu3  ;;  %v1427_v14 = vadd.f32 %v1426_v1, %v1362_v25  ;;  %v3438_v1 = vld [vmem:[#allocation16_spill] sm:$0xff] }
 0x21e   : > { %v1492_v2 = vadd.f32 %v1491_v35, %v1427_v14  ;;  %v3439_v35 = vld [vmem:[#allocation17_spill] sm:$0xff] }
 0x220   : > { %v1807_v50 = vadd.f32 %v1492_v2, %v3198_v13  ;;  %1688 = vmatmul.f32.gmra.mxu2 %v3029_v10  ;;  %v1299_v59 = vpop.f32.mrf.mxu0 }
 0x221   : > { %v1364_v51 = vpop.f32.mrf.mxu1  ;;  %1753 = vmatmul.f32.gmra.mxu3 %v3033_v5 }
 0x222   : > { %v1365_v63 = vadd.f32 %v1364_v51, %v1299_v59  ;;  %1871 = vst [vmem:[%s2809_s20 + $0xd0] sm:$0xff] %v1807_v50  ;;  %v3440_v51 = vld [vmem:[#allocation18_spill] sm:$0xff] }
 0x223   : > { %v1429_v28 = vpop.f32.mrf.mxu2  ;;  %1558 = vmatmul.f32.gmra.mxu0 %v3038_v32 }
 0x224   : > { %1623 = vmatmul.f32.gmra.mxu1 %v3042_v33  ;;  %v1494_v54 = vpop.f32.mrf.mxu3  ;;  %v1430_v20 = vadd.f32 %v1429_v28, %v1365_v63 }
 0x226   : > { %v1495_v22 = vadd.f32 %v1494_v54, %v1430_v20  ;;  %v3441_v54 = vld [vmem:[#allocation19_spill] sm:$0xff] }
 0x228   : > { %v1811_v27 = vadd.f32 %v1495_v22, %v3198_v13  ;;  %1691 = vmatmul.f32.gmra.mxu2 %v3047_v34  ;;  %v1302_v10 = vpop.f32.mrf.mxu0 }
 0x229   : > { %v1367_v19 = vpop.f32.mrf.mxu1  ;;  %1756 = vmatmul.f32.gmra.mxu3 %v3051_v46 }
 0x22a   : > { %v1368_v5 = vadd.f32 %v1367_v19, %v1302_v10  ;;  %1875 = vst [vmem:[%s2809_s20 + $0xf0] sm:$0xff] %v1811_v27  ;;  %v3442_v27 = vld [vmem:[#allocation20_spill] sm:$0xff]  ;;  %v3443_v10 = vld [vmem:[#allocation21_spill] sm:$0xff] }
 0x22b   : > { %v1432_v56 = vpop.f32.mrf.mxu2  ;;  %1561 = vmatmul.f32.gmra.mxu0 %v3056_v62 }
 0x22c   : > { %1626 = vmatmul.f32.gmra.mxu1 %v3060_v52  ;;  %v1497_v32 = vpop.f32.mrf.mxu3  ;;  %v1433_v33 = vadd.f32 %v1432_v56, %v1368_v5 }
 0x22e   : > { %v1498_v43 = vadd.f32 %v1497_v32, %v1433_v33 }
 0x230   : > { %v1815_v37 = vadd.f32 %v1498_v43, %v3198_v13  ;;  %1694 = vmatmul.f32.gmra.mxu2 %v3065_v8  ;;  %v1305_v34 = vpop.f32.mrf.mxu0 }
 0x231   : > { %v1370_v15 = vpop.f32.mrf.mxu1  ;;  %1759 = vmatmul.f32.gmra.mxu3 %v3069_v4 }
 0x232   : > { %v1371_v46 = vadd.f32 %v1370_v15, %v1305_v34  ;;  %1879 = vst [vmem:[%s2809_s20 + $0x110] sm:$0xff] %v1815_v37  ;;  %v3444_v37 = vld [vmem:[#allocation22_spill] sm:$0xff] }
 0x233   : > { %v1435_v60 = vpop.f32.mrf.mxu2  ;;  %1564 = vmatmul.f32.gmra.mxu0 %v3074_v49 }
 0x234   : > { %1629 = vmatmul.f32.gmra.mxu1 %v3078_v30  ;;  %v1500_v62 = vpop.f32.mrf.mxu3  ;;  %v1436_v52 = vadd.f32 %v1435_v60, %v1371_v46  ;;  %v3445_v46 = vld [vmem:[#allocation23_spill] sm:$0xff]  ;;  %v3446_v60 = vld [vmem:[#allocation24_spill] sm:$0xff] }
 0x236   : > { %v1501_v21 = vadd.f32 %v1500_v62, %v1436_v52 }
 0x238   : > { %v1819_v40 = vadd.f32 %v1501_v21, %v3198_v13  ;;  %1697 = vmatmul.f32.gmra.mxu2 %v3083_v36  ;;  %v1308_v8 = vpop.f32.mrf.mxu0 }
 0x239   : > { %v1373_v9 = vpop.f32.mrf.mxu1  ;;  %1762 = vmatmul.f32.gmra.mxu3 %v3087_v39 }
 0x23a   : > { %v1374_v4 = vadd.f32 %v1373_v9, %v1308_v8  ;;  %1883 = vst [vmem:[%s2809_s20 + $0x130] sm:$0xff] %v1819_v40 }
 0x23b   : > { %v1438_v41 = vpop.f32.mrf.mxu2  ;;  %1567 = vmatmul.f32.gmra.mxu0 %v3092_v42 }
 0x23c   : > { %1632 = vmatmul.f32.gmra.mxu1 %v3096_v6  ;;  %v1503_v49 = vpop.f32.mrf.mxu3  ;;  %v1439_v30 = vadd.f32 %v1438_v41, %v1374_v4 }
 0x23e   : > { %v1504_v23 = vadd.f32 %v1503_v49, %v1439_v30  ;;  %v3293_v30 = vperm.slane %v3195_v57, 3 }
 0x240   : > { %v1823_v55 = vadd.f32 %v1504_v23, %v3198_v13  ;;  %1700 = vmatmul.f32.gmra.mxu2 %v3101_v17  ;;  %v1311_v36 = vpop.f32.mrf.mxu0 }
 0x241   : > { %v1376_v3 = vpop.f32.mrf.mxu1  ;;  %1765 = vmatmul.f32.gmra.mxu3 %v3105_v44 }
 0x242   : > { %v1377_v39 = vadd.f32 %v1376_v3, %v1311_v36  ;;  %1887 = vst [vmem:[%s2809_s20 + $0x150] sm:$0xff] %v1823_v55 }
 0x243   : > { %v1441_v18 = vpop.f32.mrf.mxu2  ;;  %1570 = vmatmul.f32.gmra.mxu0 %v3110_v38  ;;  %v3435_v38 = vld [vmem:[#allocation13_spill] sm:$0xff] }
 0x244   : > { %1635 = vmatmul.f32.gmra.mxu1 %v3114_v47  ;;  %v1506_v42 = vpop.f32.mrf.mxu3  ;;  %v1442_v6 = vadd.f32 %v1441_v18, %v1377_v39 }
 0x246   : > { %v1507_v45 = vadd.f32 %v1506_v42, %v1442_v6 }
 0x248   : > { %v1827_v0 = vadd.f32 %v1507_v45, %v3198_v13  ;;  %1703 = vmatmul.f32.gmra.mxu2 %v3119_v12  ;;  %v1314_v17 = vpop.f32.mrf.mxu0 }
 0x249   : > { %v1379_v58 = vpop.f32.mrf.mxu1  ;;  %1768 = vmatmul.f32.gmra.mxu3 %v3123_v24 }
 0x24a   : > { %v1380_v44 = vadd.f32 %v1379_v58, %v1314_v17  ;;  %1891 = vst [vmem:[%s2809_s20 + $0x170] sm:$0xff] %v1827_v0 }
 0x24b   : > { %v1444_v11 = vpop.f32.mrf.mxu2  ;;  %1573 = vmatmul.f32.gmra.mxu0 %v3434_v53 }
 0x24c   : > { %1638 = vmatmul.f32.gmra.mxu1 %v3435_v38  ;;  %v1509_v47 = vpop.f32.mrf.mxu3  ;;  %v1445_v48 = vadd.f32 %v1444_v11, %v1380_v44 }
 0x24e   : > { %v1510_v29 = vadd.f32 %v1509_v47, %v1445_v48 }
 0x250   : > { %v1831_v26 = vadd.f32 %v1510_v29, %v3198_v13  ;;  %1706 = vmatmul.f32.gmra.mxu2 %v3436_v16  ;;  %v1317_v12 = vpop.f32.mrf.mxu0 }
 0x251   : > { %v1382_v61 = vpop.f32.mrf.mxu1  ;;  %1771 = vmatmul.f32.gmra.mxu3 %v3437_v31 }
 0x252   : > { %v1383_v24 = vadd.f32 %v1382_v61, %v1317_v12  ;;  %1895 = vst [vmem:[%s2809_s20 + $0x190] sm:$0xff] %v1831_v26 }
 0x253   : > { %v1447_v25 = vpop.f32.mrf.mxu2  ;;  %1576 = vmatmul.f32.gmra.mxu0 %v3438_v1 }
 0x254   : > { %1641 = vmatmul.f32.gmra.mxu1 %v3439_v35  ;;  %v1512_v14 = vpop.f32.mrf.mxu3  ;;  %v1448_v2 = vadd.f32 %v1447_v25, %v1383_v24 }
 0x256   : > { %v1513_v50 = vadd.f32 %v1512_v14, %v1448_v2 }
 0x258   : > { %v1835_v59 = vadd.f32 %v1513_v50, %v3198_v13  ;;  %1709 = vmatmul.f32.gmra.mxu2 %v3440_v51  ;;  %v1320_v63 = vpop.f32.mrf.mxu0 }
 0x259   : > { %v1385_v28 = vpop.f32.mrf.mxu1  ;;  %1774 = vmatmul.f32.gmra.mxu3 %v3441_v54 }
 0x25a   : > { %v1386_v20 = vadd.f32 %v1385_v28, %v1320_v63  ;;  %1899 = vst [vmem:[%s2809_s20 + $0x1b0] sm:$0xff] %v1835_v59 }
 0x25b   : > { %v1450_v22 = vpop.f32.mrf.mxu2  ;;  %1579 = vmatmul.f32.gmra.mxu0 %v3442_v27 }
 0x25c   : > { %1644 = vmatmul.f32.gmra.mxu1 %v3443_v10  ;;  %v1515_v19 = vpop.f32.mrf.mxu3  ;;  %v1451_v5 = vadd.f32 %v1450_v22, %v1386_v20 }
 0x25e   : > { %v1516_v56 = vadd.f32 %v1515_v19, %v1451_v5 }
 0x260   : > { %v1839_v32 = vadd.f32 %v1516_v56, %v3198_v13  ;;  %1712 = vmatmul.f32.gmra.mxu2 %v3173_v7  ;;  %v1323_v33 = vpop.f32.mrf.mxu0 }
 0x261   : > { %v1388_v43 = vpop.f32.mrf.mxu1  ;;  %1777 = vmatmul.f32.gmra.mxu3 %v3444_v37 }
 0x262   : > { %v1389_v34 = vadd.f32 %v1388_v43, %v1323_v33  ;;  %1903 = vst [vmem:[%s2809_s20 + $0x1d0] sm:$0xff] %v1839_v32 }
 0x263   : > { %v1453_v15 = vpop.f32.mrf.mxu2  ;;  %1582 = vmatmul.f32.gmra.mxu0 %v3445_v46 }
 0x264   : > { %1647 = vmatmul.f32.gmra.mxu1 %v3446_v60  ;;  %v1518_v62 = vpop.f32.mrf.mxu3  ;;  %v1454_v52 = vadd.f32 %v1453_v15, %v1389_v34 }
 0x266   : > { %v1519_v21 = vadd.f32 %v1518_v62, %v1454_v52 }
 0x268   : > { %v1843_v40 = vadd.f32 %v1519_v21, %v3198_v13  ;;  %v1538_v8 = vpop.f32.mrf.mxu0 }
 0x269   : > { %v1603_v7 = vpop.f32.mrf.mxu1 }
 0x26a   : > { %v1604_v9 = vadd.f32 %v1603_v7, %v1538_v8  ;;  %1907 = vst [vmem:[%s2809_s20 + $0x1f0] sm:$0xff] %v1843_v40 }
 0x26b   : > { %v1668_v4 = vpop.f32.mrf.mxu2 }
 0x26c   : > { %v1733_v41 = vpop.f32.mrf.mxu3  ;;  %v1669_v49 = vadd.f32 %v1668_v4, %v1604_v9 }
 0x26e   : > { %v1734_v23 = vadd.f32 %v1733_v41, %v1669_v49 }
 0x270   : > { %v1784_v55 = vadd.f32 %v1734_v23, %v3293_v30  ;;  %v1541_v36 = vpop.f32.mrf.mxu0 }
 0x271   : > { %v1606_v3 = vpop.f32.mrf.mxu1 }
 0x272   : > { %v1607_v39 = vadd.f32 %v1606_v3, %v1541_v36  ;;  %1848 = vst [vmem:[%s2809_s20 + $0x18] sm:$0xff] %v1784_v55 }
 0x273   : > { %v1671_v18 = vpop.f32.mrf.mxu2 }
 0x274   : > { %v1736_v13 = vpop.f32.mrf.mxu3  ;;  %v1672_v42 = vadd.f32 %v1671_v18, %v1607_v39 }
 0x276   : > { %v1737_v6 = vadd.f32 %v1736_v13, %v1672_v42 }
 0x278   : > { %v1788_v45 = vadd.f32 %v1737_v6, %v3293_v30  ;;  %v1544_v0 = vpop.f32.mrf.mxu0 }
 0x279   : > { %v1609_v17 = vpop.f32.mrf.mxu1 }
 0x27a   : > { %v1610_v58 = vadd.f32 %v1609_v17, %v1544_v0  ;;  %1852 = vst [vmem:[%s2809_s20 + $0x38] sm:$0xff] %v1788_v45 }
 0x27b   : > { %v1674_v57 = vpop.f32.mrf.mxu2 }
 0x27c   : > { %v1739_v44 = vpop.f32.mrf.mxu3  ;;  %v1675_v11 = vadd.f32 %v1674_v57, %v1610_v58 }
 0x27e   : > { %v1740_v53 = vadd.f32 %v1739_v44, %v1675_v11 }
 0x280   : > { %v1792_v38 = vadd.f32 %v1740_v53, %v3293_v30  ;;  %v1547_v47 = vpop.f32.mrf.mxu0 }
 0x281   : > { %v1612_v48 = vpop.f32.mrf.mxu1 }
 0x282   : > { %v1613_v29 = vadd.f32 %v1612_v48, %v1547_v47  ;;  %1856 = vst [vmem:[%s2809_s20 + $0x58] sm:$0xff] %v1792_v38 }
 0x283   : > { %v1677_v26 = vpop.f32.mrf.mxu2 }
 0x284   : > { %v1742_v16 = vpop.f32.mrf.mxu3  ;;  %v1678_v12 = vadd.f32 %v1677_v26, %v1613_v29 }
 0x286   : > { %v1743_v61 = vadd.f32 %v1742_v16, %v1678_v12 }
 0x288   : > { %v1796_v31 = vadd.f32 %v1743_v61, %v3293_v30  ;;  %v1550_v24 = vpop.f32.mrf.mxu0 }
 0x289   : > { %v1615_v25 = vpop.f32.mrf.mxu1 }
 0x28a   : > { %v1616_v1 = vadd.f32 %v1615_v25, %v1550_v24  ;;  %1860 = vst [vmem:[%s2809_s20 + $0x78] sm:$0xff] %v1796_v31 }
 0x28b   : > { %v1680_v35 = vpop.f32.mrf.mxu2 }
 0x28c   : > { %v1745_v14 = vpop.f32.mrf.mxu3  ;;  %v1681_v2 = vadd.f32 %v1680_v35, %v1616_v1 }
 0x28e   : > { %v1746_v50 = vadd.f32 %v1745_v14, %v1681_v2 }
 0x290   : > { %v1800_v59 = vadd.f32 %v1746_v50, %v3293_v30  ;;  %v1553_v51 = vpop.f32.mrf.mxu0 }
 0x291   : > { %v1618_v63 = vpop.f32.mrf.mxu1 }
 0x292   : > { %v1619_v28 = vadd.f32 %v1618_v63, %v1553_v51  ;;  %1864 = vst [vmem:[%s2809_s20 + $0x98] sm:$0xff] %v1800_v59 }
 0x293   : > { %v1683_v54 = vpop.f32.mrf.mxu2 }
 0x294   : > { %v1748_v20 = vpop.f32.mrf.mxu3  ;;  %v1684_v22 = vadd.f32 %v1683_v54, %v1619_v28 }
 0x296   : > { %v1749_v27 = vadd.f32 %v1748_v20, %v1684_v22 }
 0x298   : > { %v1804_v10 = vadd.f32 %v1749_v27, %v3293_v30  ;;  %v1556_v19 = vpop.f32.mrf.mxu0 }
 0x299   : > { %v1621_v5 = vpop.f32.mrf.mxu1 }
 0x29a   : > { %v1622_v56 = vadd.f32 %v1621_v5, %v1556_v19  ;;  %1868 = vst [vmem:[%s2809_s20 + $0xb8] sm:$0xff] %v1804_v10 }
 0x29b   : > { %v1686_v32 = vpop.f32.mrf.mxu2 }
 0x29c   : > { %v1751_v33 = vpop.f32.mrf.mxu3  ;;  %v1687_v43 = vadd.f32 %v1686_v32, %v1622_v56 }
 0x29e   : > { %v1752_v37 = vadd.f32 %v1751_v33, %v1687_v43 }
 0x2a0   : > { %v1808_v34 = vadd.f32 %v1752_v37, %v3293_v30  ;;  %v1559_v15 = vpop.f32.mrf.mxu0 }
 0x2a1   : > { %v1624_v46 = vpop.f32.mrf.mxu1 }
 0x2a2   : > { %v1625_v60 = vadd.f32 %v1624_v46, %v1559_v15  ;;  %1872 = vst [vmem:[%s2809_s20 + $0xd8] sm:$0xff] %v1808_v34 }
 0x2a3   : > { %v1689_v62 = vpop.f32.mrf.mxu2 }
 0x2a4   : > { %v1754_v52 = vpop.f32.mrf.mxu3  ;;  %v1690_v21 = vadd.f32 %v1689_v62, %v1625_v60 }
 0x2a6   : > { %v1755_v40 = vadd.f32 %v1754_v52, %v1690_v21 }
 0x2a8   : > { %v1812_v8 = vadd.f32 %v1755_v40, %v3293_v30  ;;  %v1562_v7 = vpop.f32.mrf.mxu0 }
 0x2a9   : > { %v1627_v9 = vpop.f32.mrf.mxu1 }
 0x2aa   : > { %v1628_v4 = vadd.f32 %v1627_v9, %v1562_v7  ;;  %1876 = vst [vmem:[%s2809_s20 + $0xf8] sm:$0xff] %v1812_v8 }
 0x2ab   : > { %v1692_v41 = vpop.f32.mrf.mxu2 }
 0x2ac   : > { %v1757_v49 = vpop.f32.mrf.mxu3  ;;  %v1693_v23 = vadd.f32 %v1692_v41, %v1628_v4 }
 0x2ae   : > { %v1758_v55 = vadd.f32 %v1757_v49, %v1693_v23 }
 0x2b0   : > { %v1816_v36 = vadd.f32 %v1758_v55, %v3293_v30  ;;  %v1565_v3 = vpop.f32.mrf.mxu0 }
 0x2b1   : > { %v1630_v39 = vpop.f32.mrf.mxu1 }
 0x2b2   : > { %v1631_v18 = vadd.f32 %v1630_v39, %v1565_v3  ;;  %1880 = vst [vmem:[%s2809_s20 + $0x118] sm:$0xff] %v1816_v36 }
 0x2b3   : > { %v1695_v13 = vpop.f32.mrf.mxu2 }
 0x2b4   : > { %v1760_v42 = vpop.f32.mrf.mxu3  ;;  %v1696_v6 = vadd.f32 %v1695_v13, %v1631_v18 }
 0x2b6   : > { %v1761_v45 = vadd.f32 %v1760_v42, %v1696_v6 }
 0x2b8   : > { %v1820_v0 = vadd.f32 %v1761_v45, %v3293_v30  ;;  %v1568_v17 = vpop.f32.mrf.mxu0 }
 0x2b9   : > { %v1633_v58 = vpop.f32.mrf.mxu1 }
 0x2ba   : > { %v1634_v57 = vadd.f32 %v1633_v58, %v1568_v17  ;;  %1884 = vst [vmem:[%s2809_s20 + $0x138] sm:$0xff] %v1820_v0 }
 0x2bb   : > { %v1698_v44 = vpop.f32.mrf.mxu2 }
 0x2bc   : > { %v1763_v11 = vpop.f32.mrf.mxu3  ;;  %v1699_v53 = vadd.f32 %v1698_v44, %v1634_v57 }
 0x2be   : > { %v1764_v38 = vadd.f32 %v1763_v11, %v1699_v53 }
 0x2c0   : > { %v1824_v47 = vadd.f32 %v1764_v38, %v3293_v30  ;;  %v1571_v48 = vpop.f32.mrf.mxu0 }
 0x2c1   : > { %v1636_v29 = vpop.f32.mrf.mxu1 }
 0x2c2   : > { %v1637_v26 = vadd.f32 %v1636_v29, %v1571_v48  ;;  %1888 = vst [vmem:[%s2809_s20 + $0x158] sm:$0xff] %v1824_v47 }
 0x2c3   : > { %v1701_v16 = vpop.f32.mrf.mxu2 }
 0x2c4   : > { %v1766_v12 = vpop.f32.mrf.mxu3  ;;  %v1702_v61 = vadd.f32 %v1701_v16, %v1637_v26 }
 0x2c6   : > { %v1767_v31 = vadd.f32 %v1766_v12, %v1702_v61 }
 0x2c8   : > { %v1828_v24 = vadd.f32 %v1767_v31, %v3293_v30  ;;  %v1574_v25 = vpop.f32.mrf.mxu0 }
 0x2c9   : > { %v1639_v1 = vpop.f32.mrf.mxu1 }
 0x2ca   : > { %v1640_v35 = vadd.f32 %v1639_v1, %v1574_v25  ;;  %1892 = vst [vmem:[%s2809_s20 + $0x178] sm:$0xff] %v1828_v24 }
 0x2cb   : > { %v1704_v14 = vpop.f32.mrf.mxu2 }
 0x2cc   : > { %v1769_v2 = vpop.f32.mrf.mxu3  ;;  %v1705_v50 = vadd.f32 %v1704_v14, %v1640_v35 }
 0x2ce   : > { %v1770_v59 = vadd.f32 %v1769_v2, %v1705_v50 }
 0x2d0   : > { %v1832_v51 = vadd.f32 %v1770_v59, %v3293_v30  ;;  %v1577_v63 = vpop.f32.mrf.mxu0 }
 0x2d1   : > { %v1642_v28 = vpop.f32.mrf.mxu1 }
 0x2d2   : > { %v1643_v54 = vadd.f32 %v1642_v28, %v1577_v63  ;;  %1896 = vst [vmem:[%s2809_s20 + $0x198] sm:$0xff] %v1832_v51 }
 0x2d3   : > { %v1707_v20 = vpop.f32.mrf.mxu2 }
 0x2d4   : > { %v1772_v22 = vpop.f32.mrf.mxu3  ;;  %v1708_v27 = vadd.f32 %v1707_v20, %v1643_v54 }
 0x2d6   : > { %v1773_v10 = vadd.f32 %v1772_v22, %v1708_v27 }
 0x2d8   : > { %v1836_v19 = vadd.f32 %v1773_v10, %v3293_v30  ;;  %v1580_v5 = vpop.f32.mrf.mxu0 }
 0x2d9   : > { %v1645_v56 = vpop.f32.mrf.mxu1 }
 0x2da   : > { %v1646_v32 = vadd.f32 %v1645_v56, %v1580_v5  ;;  %1900 = vst [vmem:[%s2809_s20 + $0x1b8] sm:$0xff] %v1836_v19 }
 0x2db   : > { %v1710_v33 = vpop.f32.mrf.mxu2 }
 0x2dc   : > { %v1775_v43 = vpop.f32.mrf.mxu3  ;;  %v1711_v37 = vadd.f32 %v1710_v33, %v1646_v32 }
 0x2de   : > { %v1776_v34 = vadd.f32 %v1775_v43, %v1711_v37 }
 0x2e0   : > { %v1840_v15 = vadd.f32 %v1776_v34, %v3293_v30  ;;  %v1583_v46 = vpop.f32.mrf.mxu0 }
 0x2e1   : > { %v1648_v60 = vpop.f32.mrf.mxu1 }
 0x2e2   : > { %v1649_v62 = vadd.f32 %v1648_v60, %v1583_v46  ;;  %1904 = vst [vmem:[%s2809_s20 + $0x1d8] sm:$0xff] %v1840_v15 }
 0x2e3   : > { %v1713_v52 = vpop.f32.mrf.mxu2 }
 0x2e4   : > { %v1778_v21 = vpop.f32.mrf.mxu3  ;;  %v1714_v40 = vadd.f32 %v1713_v52, %v1649_v62 }
 0x2e6   : > { %v1779_v8 = vadd.f32 %v1778_v21, %v1714_v40 }
 0x2e8   : > { %v1844_v7 = vadd.f32 %v1779_v8, %v3293_v30 }
 0x2ea   : > { %1908 = vst [vmem:[%s2809_s20 + $0x1f8] sm:$0xff] %v1844_v7 }
 0x2eb   : > { %2338 = shalt.err (!%p2335_p0)
}
 0x2ec   : > { %s2403_s10 = smov 512   ;;  %s2404_s24 = smov 32  }
 0x2ed   : > { %2079 = dma.vmem_to_hbm [thread:$0]  (%p2500_p2), %s1926_s23, 8192, %s1928_s27, %s1910_s15, %s2403_s10, %s2403_s10, %s2404_s24  }
 0x2ee PF: > { %s1942_s18 = sand.u32 1, %s2377_s12   ;;  %p2093_p4 = pnand %p2049_p10, %p2470_p5 }
 0x2ef   : > { %s1943_s20 = scalar_lea.sflag [#allocation4], %s1942_s18 }
 0x2f0   : > { %p2094_p6 = pneg %p2093_p4 }
 0x2f2   : > { %2372 = dma.done.wait (%p2094_p6), %s1943_s20, 8192  }
 0x2f3   : > { %2374 = vsyncadd (%p2094_p6), %s1943_s20, 4294959104  ;;  %s20_s17 = sadd.s32 1, %s2397_s17   ;;  %s3447_s12 = smov %s2381_s13 }
 0x2f4   : > { %p17_p8 = scmp.ge.s32.totalorder %s20_s17, 4   ;;  %s3448_s13 = smov %s2385_s14 }
 0x2f5   : > { %s3449_s14 = smov %s2510_s25  ;;  %s3450_s15 = smov %s2393_s16 }
 0x2f6   : > { %s3451_s16 = smov %s3453_s9  ;;  %19 = sbr.rel (!%p17_p8) target bundleno = 7 (0x7), region = 91 }
 0x2fb   :  { %1949 = vsyncpa [#allocation3], 1 }
 0x2fc   :  { %1951 = vsyncpa [#allocation3 + $0x1], 1 }
 0x2fd   :  { %1952 = vsyncpa [#allocation6], 1 }
 0x2fe   :  { %1953 = vsyncpa [#allocation4], 1 }
 0x2ff   :  { %1955 = vsyncpa [#allocation4 + $0x1], 1 }

</bundles_post_ra>
